<compile_context>
chip_gen: v7x
topology: tpu7x:2x2x1
jax: 0.10.0
libtpu: 0.0.40
codegen_flags: <defaults>
</compile_context>

<pallas_src>
import functools

import numpy as np
import jax
import jax.numpy as jnp
from jax import lax
from jax.experimental import pallas as pl
from jax.experimental.pallas import tpu as pltpu


def baseblock_kernel(x_ref, halo_ref, wt_ref, bmat_ref, wp_ref, shift_ref,
                     o_ref, xbuf_ref, *, T, dilation, pw, residual, base):
    """One (batch, time-tile) block.

    x_ref     : (C, F, tT)            centre input block (NCHW, T on lanes)
    halo_ref  : (C, F, max(2*pw, 1))  left/right halo columns for this tile
    wt_ref    : (kw, C, F, 1)         per-(channel, freq-row) time-conv taps
    bmat_ref  : (C, F, F)             per-channel banded frequency-conv matrices
    wp_ref    : (C, O, 1, 1)          1x1 pointwise weights * folded BN scale
    shift_ref : (O, 1, 1)             folded BN shift
    o_ref     : (O, F, tT)            output block
    xbuf_ref  : (C, F, base + tT + 128) f32 halo'd staging scratch
    """
    f32 = jnp.float32
    C, F, tT = x_ref.shape
    kw = wt_ref.shape[0]
    O = o_ref.shape[0]
    t = pl.program_id(1)

    # --- stage the (garbage-cleaned) centre block + halo columns into the
    #     lane-aligned scratch; every tap below is then a static slice. -------
    xc = x_ref[...].astype(f32)
    if T % tT != 0:
        col = t * tT + lax.broadcasted_iota(jnp.int32, (F, tT), 1)
        xc = jnp.where(col < T, xc, 0.0)     # zero ragged tail of the last tile
    xbuf_ref[:, :, base:base + tT] = xc
    if pw > 0:
        halo = halo_ref[...].astype(f32)
        xbuf_ref[:, :, base - pw:base] = halo[:, :, :pw]
        xbuf_ref[:, :, base + tT:base + tT + pw] = halo[:, :, pw:2 * pw]

    # --- process the tile in <=256-lane sub-chunks (bounded vreg pressure) ---
    sub_sizes = [256] * (tT // 256) + ([tT % 256] if tT % 256 else [])
    q0 = 0
    for sub in sub_sizes:
        y = jnp.zeros((O, F, sub), f32) + shift_ref[...].astype(f32)
        for c in range(C):
            xc_sub = xbuf_ref[c, :, base + q0:base + q0 + sub]
            # depthwise time conv (VPU; lane-shifted static slices of scratch)
            s = None
            for j in range(kw):
                off = j * dilation - pw
                v = xc_sub if off == 0 else \
                    xbuf_ref[c, :, base + q0 + off:base + q0 + off + sub]
                term = wt_ref[j, c].astype(f32) * v
                s = term if s is None else s + term
            # depthwise frequency conv as a small banded matmul (MXU);
            # zero padding at the F boundary is folded into bmat.
            s = s + jnp.dot(bmat_ref[c].astype(f32), xc_sub,
                            preferred_element_type=f32)
            # 1x1 pointwise conv with BN scale folded in (C, O tiny -> VPU).
            y = y + wp_ref[c].astype(f32) * s
        # SiLU (exp + approximate reciprocal both go to the EUP slot).
        y = y * pl.reciprocal(1.0 + jnp.exp(-y), approx=True)
        # TODO(synk): nn.Dropout treated as identity (inference mode, no RNG mask).
        if residual:
            y = y + xbuf_ref[:, :, base + q0:base + q0 + sub]
        o_ref[:, :, q0:q0 + sub] = jnp.maximum(y, 0.0).astype(o_ref.dtype)
        q0 += sub


def _round_up(v, m):
    return -(-v // m) * m


def _pick_time_tile(T, C, F, itemsize, max_time_tile=None):
    """Lane-aligned (multiple of 128) time tile: big enough to amortize the
    per-grid-step overhead (~1 MiB of input payload), small enough for the
    in-kernel staging scratch."""
    t_full = _round_up(T, 128)
    target = _round_up(max(128, (1 << 20) // max(1, C * F * itemsize)), 128)
    tile = min(t_full, 2048, target)
    if max_time_tile is not None:
        tile = min(tile, max(128, _round_up(max_time_tile, 128)))
    return max(128, tile)


def base_block_forward(x_nchw, wt_dw, wf_dw, wp_oc, gamma, beta, run_mean,
                       run_var, *, kernel_size, padding=0, dilation=1,
                       num_groups=None, eps=1e-5, max_time_tile=None):
    """x_nchw: (N, C, F, T) exactly like PyTorch. Returns (N, O, F, T)."""
    N, C, F, T = x_nchw.shape
    kh, kw = kernel_size
    g = num_groups if num_groups else 1
    O = wp_oc.shape[0]
    residual = (C == O)
    pw = (kw - 1) * dilation // 2
    ph = padding
    f32 = jnp.float32

    # Same shape assumptions as the PyTorch usage: ConvT preserves T and the
    # chosen padding makes ConvF preserve F, so xt + xf is well defined.
    assert ((kw - 1) * dilation) % 2 == 0 and 2 * ph == kh - 1 and F % g == 0
    # TODO(synk): stride != 1 (AdaptiveAvgPool2d branch of ConvTF) not implemented.
    # TODO(synk): training-mode BatchNorm (batch statistics) not implemented.

    # ---- fold BatchNorm (inference running stats) into the pointwise conv ---
    scale = gamma / jnp.sqrt(run_var + eps)                           # (O,)
    wp_cf = jnp.transpose(wp_oc * scale[:, None])[:, :, None, None]   # (C, O, 1, 1)
    shift = (beta - run_mean * scale)[:, None, None]                  # (O, 1, 1)

    # ---- expand grouped depthwise time-conv weight to per-(c, f) taps -------
    # PyTorch's reshape(N, C*g, F//g, T) maps (c, f) -> channel c*g + f//(F//g).
    band = jnp.arange(F) // (F // g)                                  # (F,)
    ch_idx = jnp.arange(C)[:, None] * g + band[None, :]               # (C, F)
    wt_full = jnp.transpose(wt_dw[ch_idx], (2, 0, 1))[..., None]      # (kw, C, F, 1)

    # ---- frequency conv as per-channel banded (F, F) matrices ---------------
    # bmat[c, f, f'] = wf[c, f' - f + ph] inside the band, else 0 (== zero pad).
    fi = jnp.arange(F)
    tap = fi[None, :] - fi[:, None] + ph                              # (F, F)
    in_band = (tap >= 0) & (tap < kh)
    bmat = jnp.where(in_band[None], wf_dw[:, jnp.clip(tap, 0, kh - 1)], 0.0)

    # ---- time tiling + tiny per-tile halo columns (no big pad / stack) ------
    tT = _pick_time_tile(T, C, F, x_nchw.dtype.itemsize, max_time_tile)
    nT = pl.cdiv(T, tT)
    hw = max(2 * pw, 1)
    zero_col = jnp.zeros((N, C, F, 1), x_nchw.dtype)
    halo_tiles = []
    for t in range(nT):
        cols = []
        for c0 in (list(range(t * tT - pw, t * tT)) +
                   list(range((t + 1) * tT, (t + 1) * tT + pw))):
            cols.append(x_nchw[..., c0:c0 + 1] if 0 <= c0 < T else zero_col)
        if not cols:
            cols = [zero_col]
        halo_tiles.append(jnp.concatenate(cols, axis=-1))             # (N, C, F, hw)
    x_halo = jnp.stack(halo_tiles, axis=1)                            # (N, nT, C, F, hw)

    base = 128                       # lane-aligned start of the centre columns
    buf_cols = base + tT + 128

    # ---- VMEM budget with padded dims (capped <= 32 MiB: safe on v7x) -------
    f8 = _round_up(F, 8)
    est = 4 * (2 * (C * f8 * tT + C * f8 * 128 + O * f8 * tT
                    + kw * C * f8 * 128 + C * f8 * _round_up(F, 128)
                    + (C * O + O) * 8 * 128)
               + C * f8 * buf_cols)
    vmem_limit = int(min(32 << 20, max(16 << 20, 4 * est)))

    kernel = functools.partial(baseblock_kernel, T=T, dilation=dilation,
                               pw=pw, residual=residual, base=base)
    return pl.pallas_call(
        kernel,
        out_shape=jax.ShapeDtypeStruct((N, O, F, T), x_nchw.dtype),
        grid=(N, nT),
        in_specs=[
            pl.BlockSpec((None, C, F, tT), lambda n, t: (n, 0, 0, t)),
            pl.BlockSpec((None, None, C, F, hw), lambda n, t: (n, t, 0, 0, 0)),
            pl.BlockSpec((kw, C, F, 1), lambda n, t: (0, 0, 0, 0)),
            pl.BlockSpec((C, F, F), lambda n, t: (0, 0, 0)),
            pl.BlockSpec((C, O, 1, 1), lambda n, t: (0, 0, 0, 0)),
            pl.BlockSpec((O, 1, 1), lambda n, t: (0, 0, 0)),
        ],
        out_specs=pl.BlockSpec((None, O, F, tT), lambda n, t: (n, 0, 0, t)),
        scratch_shapes=[pltpu.VMEM((C, F, buf_cols), f32)],
        compiler_params=pltpu.CompilerParams(
            dimension_semantics=("parallel", "parallel"),
            vmem_limit_bytes=vmem_limit),
    )(x_nchw, x_halo, wt_full.astype(f32), bmat.astype(f32),
      wp_cf.astype(f32), shift.astype(f32))


def ref_forward(x, wt_dw, wf_dw, wp_oc, gamma, beta, run_mean, run_var,
                *, kernel_size, padding, dilation, num_groups, eps=1e-5):
    """Pure-JAX reference mimicking the PyTorch module (NCHW, eval mode)."""
    N, C, F, T = x.shape
    kh, kw = kernel_size
    g = num_groups if num_groups else 1

    # ConvT (grouped depthwise over time).
    xr = x.reshape(N, C * g, F // g, T)
    pw = (kw - 1) * dilation // 2
    xrp = jnp.pad(xr, ((0, 0), (0, 0), (0, 0), (pw, pw)))
    Tt = T + 2 * pw - dilation * (kw - 1)
    xt = sum(wt_dw[None, :, j, None, None] *
             xrp[:, :, :, j * dilation:j * dilation + Tt] for j in range(kw))
    xt = xt.reshape(N, C, F, Tt)

    # ConvF (depthwise over frequency).
    xfp = jnp.pad(x, ((0, 0), (0, 0), (padding, padding), (0, 0)))
    Ff = F + 2 * padding - (kh - 1)
    xf = sum(wf_dw[None, :, i, None, None] * xfp[:, :, i:i + Ff, :]
             for i in range(kh))

    s = xt + xf
    y = jnp.einsum('oc,ncft->noft', wp_oc, s,
                   precision=jax.lax.Precision.HIGHEST)

    scale = gamma / jnp.sqrt(run_var + eps)
    shift = beta - run_mean * scale
    y = y * scale[None, :, None, None] + shift[None, :, None, None]
    y = jax.nn.silu(y)
    if C == wp_oc.shape[0]:
        y = y + x
    return jnp.maximum(y, 0.0)


if __name__ == "__main__":
    N, C, O = 2, 4, 4
    F, T = 16, 200          # T > 128 and not a multiple of 128: ragged masked store
    kernel_size = (3, 3)
    padding = 1             # keeps F size so xt + xf shapes match (as in PyTorch use)
    dilation = 1
    num_groups = 2

    key = jax.random.PRNGKey(0)
    ks = jax.random.split(key, 8)
    x = jax.random.normal(ks[0], (N, C, F, T), jnp.float32)
    # depthwise time-conv weight: Conv2d(C*g, C*g, (1, kw), groups=C*g) -> (C*g, kw)
    wt_dw = 0.3 * jax.random.normal(ks[1], (C * num_groups, kernel_size[1]), jnp.float32)
    # depthwise freq-conv weight: Conv2d(C, C, (kh, 1), groups=C) -> (C, kh)
    wf_dw = 0.3 * jax.random.normal(ks[2], (C, kernel_size[0]), jnp.float32)
    # pointwise conv weight: Conv2d(C, O, 1) -> (O, C)
    wp_oc = 0.3 * jax.random.normal(ks[3], (O, C), jnp.float32)
    # BatchNorm2d params / running stats
    gamma = 1.0 + 0.1 * jax.random.normal(ks[4], (O,), jnp.float32)
    beta = 0.1 * jax.random.normal(ks[5], (O,), jnp.float32)
    run_mean = 0.1 * jax.random.normal(ks[6], (O,), jnp.float32)
    run_var = 0.5 + jnp.abs(jax.random.normal(ks[7], (O,), jnp.float32))

    ref = ref_forward(x, wt_dw, wf_dw, wp_oc, gamma, beta, run_mean, run_var,
                      kernel_size=kernel_size, padding=padding,
                      dilation=dilation, num_groups=num_groups)

    # Default (single ragged 256-wide tile per batch element).
    out = base_block_forward(x, wt_dw, wf_dw, wp_oc, gamma, beta, run_mean,
                             run_var, kernel_size=kernel_size, padding=padding,
                             dilation=dilation, num_groups=num_groups)
    out = jax.block_until_ready(out)
    np.testing.assert_allclose(np.asarray(out), np.asarray(ref),
                               atol=1e-2, rtol=1e-2)

    # Forced small tile: exercises multi-tile halo exchange + ragged last tile.
    out_mt = base_block_forward(x, wt_dw, wf_dw, wp_oc, gamma, beta, run_mean,
                                run_var, kernel_size=kernel_size,
                                padding=padding, dilation=dilation,
                                num_groups=num_groups, max_time_tile=128)
    out_mt = jax.block_until_ready(out_mt)
    np.testing.assert_allclose(np.asarray(out_mt), np.asarray(ref),
                               atol=1e-2, rtol=1e-2)

    print("KERNEL_OK")
</pallas_src>

<mosaic_0001>
module attributes {stable_mosaic.version = 11 : i64} {
  func.func @baseblock_kernel(%arg0: i32, %arg1: i32, %arg2: memref<1x4x16x256xf32, #tpu.memory_space<vmem>>, %arg3: memref<1x1x4x16x2xf32, #tpu.memory_space<vmem>>, %arg4: memref<3x4x16x1xf32, #tpu.memory_space<vmem>>, %arg5: memref<4x16x16xf32, #tpu.memory_space<vmem>>, %arg6: memref<4x4x1x1xf32, #tpu.memory_space<vmem>>, %arg7: memref<4x1x1xf32, #tpu.memory_space<vmem>>, %arg8: memref<1x4x16x256xf32, #tpu.memory_space<vmem>>, %arg9: memref<4x16x512xf32, #tpu.memory_space<vmem>>) attributes {dimension_semantics = [#tpu.dimension_semantics<parallel>, #tpu.dimension_semantics<parallel>], iteration_bounds = array<i64: 2, 1>, scalar_prefetch = 0 : i64, scratch_operands = 1 : i64, tpu.core_type = #tpu.core_type<tc>, window_params = [{transform_indices = @transform_0, window_bounds = array<i64: 1, 4, 16, 256>}, {transform_indices = @transform_1, window_bounds = array<i64: 1, 1, 4, 16, 2>}, {pipeline_mode = #tpu.pipeline_mode<synchronous>, transform_indices = @transform_2, window_bounds = array<i64: 3, 4, 16, 1>}, {pipeline_mode = #tpu.pipeline_mode<synchronous>, transform_indices = @transform_3, window_bounds = array<i64: 4, 16, 16>}, {pipeline_mode = #tpu.pipeline_mode<synchronous>, transform_indices = @transform_4, window_bounds = array<i64: 4, 4, 1, 1>}, {pipeline_mode = #tpu.pipeline_mode<synchronous>, transform_indices = @transform_5, window_bounds = array<i64: 4, 1, 1>}, {transform_indices = @transform_6, window_bounds = array<i64: 1, 4, 16, 256>}]} {
    %c0 = arith.constant 0 : index
    %c0_0 = arith.constant 0 : index
    %c0_1 = arith.constant 0 : index
    %c0_2 = arith.constant 0 : index
    %0 = vector.load %arg2[%c0, %c0_0, %c0_1, %c0_2] : memref<1x4x16x256xf32, #tpu.memory_space<vmem>>, vector<1x4x16x256xf32>
    %1 = vector.shape_cast %0 : vector<1x4x16x256xf32> to vector<4x16x256xf32>
    %c256_i32 = arith.constant 256 : i32
    %2 = arith.muli %arg1, %c256_i32 : i32
    %3 = tpu.iota {dimensions = array<i32: 1>} : vector<16x256xi32>
    %4 = vector.broadcast %2 : i32 to vector<16x256xi32>
    %5 = arith.addi %4, %3 : vector<16x256xi32>
    %c200_i32 = arith.constant 200 : i32
    %6 = vector.broadcast %c200_i32 : i32 to vector<16x256xi32>
    %7 = arith.cmpi slt, %5, %6 : vector<16x256xi32>
    %cst = arith.constant 0.000000e+00 : f32
    %8 = vector.shape_cast %7 : vector<16x256xi1> to vector<1x16x256xi1>
    %9 = vector.broadcast %8 : vector<1x16x256xi1> to vector<4x16x256xi1>
    %10 = vector.broadcast %cst : f32 to vector<4x16x256xf32>
    %11 = arith.select %9, %1, %10 : vector<4x16x256xi1>, vector<4x16x256xf32>
    %c0_3 = arith.constant 0 : index
    %c0_4 = arith.constant 0 : index
    %c128 = arith.constant 128 : index
    %12 = vector.load %arg9[%c0_3, %c0_4, %c128] : memref<4x16x512xf32, #tpu.memory_space<vmem>>, vector<4x16x256xf32>
    tpu.vector_store %arg9[%c0_3, %c0_4, %c128], %11 {strides = array<i32>} : memref<4x16x512xf32, #tpu.memory_space<vmem>>, vector<4x16x256xf32>,
    %c0_5 = arith.constant 0 : index
    %c0_6 = arith.constant 0 : index
    %c0_7 = arith.constant 0 : index
    %c0_8 = arith.constant 0 : index
    %c0_9 = arith.constant 0 : index
    %13 = vector.load %arg3[%c0_5, %c0_6, %c0_7, %c0_8, %c0_9] : memref<1x1x4x16x2xf32, #tpu.memory_space<vmem>>, vector<1x1x4x16x2xf32>
    %14 = vector.shape_cast %13 : vector<1x1x4x16x2xf32> to vector<4x16x2xf32>
    %15 = vector.extract_strided_slice %14 {offsets = [0, 0, 0], sizes = [4, 16, 1], strides = [1, 1, 1]} : vector<4x16x2xf32> to vector<4x16x1xf32>
    %c0_10 = arith.constant 0 : index
    %c0_11 = arith.constant 0 : index
    %c127 = arith.constant 127 : index
    %16 = vector.load %arg9[%c0_10, %c0_11, %c127] : memref<4x16x512xf32, #tpu.memory_space<vmem>>, vector<4x16x1xf32>
    tpu.vector_store %arg9[%c0_10, %c0_11, %c127], %15 {strides = array<i32>} : memref<4x16x512xf32, #tpu.memory_space<vmem>>, vector<4x16x1xf32>,
    %17 = vector.extract_strided_slice %14 {offsets = [0, 0, 1], sizes = [4, 16, 1], strides = [1, 1, 1]} : vector<4x16x2xf32> to vector<4x16x1xf32>
    %c0_12 = arith.constant 0 : index
    %c0_13 = arith.constant 0 : index
    %c384 = arith.constant 384 : index
    %18 = vector.load %arg9[%c0_12, %c0_13, %c384] : memref<4x16x512xf32, #tpu.memory_space<vmem>>, vector<4x16x1xf32>
    tpu.vector_store %arg9[%c0_12, %c0_13, %c384], %17 {strides = array<i32>} : memref<4x16x512xf32, #tpu.memory_space<vmem>>, vector<4x16x1xf32>,
    %cst_14 = arith.constant 0.000000e+00 : f32
    %19 = vector.broadcast %cst_14 : f32 to vector<4x16x256xf32>
    %c0_15 = arith.constant 0 : index
    %c0_16 = arith.constant 0 : index
    %c0_17 = arith.constant 0 : index
    %20 = vector.load %arg7[%c0_15, %c0_16, %c0_17] : memref<4x1x1xf32, #tpu.memory_space<vmem>>, vector<4x1x1xf32>
    %21 = vector.broadcast %20 : vector<4x1x1xf32> to vector<4x16x256xf32>
    %22 = arith.addf %19, %21 : vector<4x16x256xf32>
    %c0_18 = arith.constant 0 : index
    %c0_19 = arith.constant 0 : index
    %c128_20 = arith.constant 128 : index
    %23 = vector.load %arg9[%c0_18, %c0_19, %c128_20] : memref<4x16x512xf32, #tpu.memory_space<vmem>>, vector<1x16x256xf32>
    %24 = vector.shape_cast %23 : vector<1x16x256xf32> to vector<16x256xf32>
    %c0_21 = arith.constant 0 : index
    %c0_22 = arith.constant 0 : index
    %c127_23 = arith.constant 127 : index
    %25 = vector.load %arg9[%c0_21, %c0_22, %c127_23] : memref<4x16x512xf32, #tpu.memory_space<vmem>>, vector<1x16x256xf32>
    %26 = vector.shape_cast %25 : vector<1x16x256xf32> to vector<16x256xf32>
    %c0_24 = arith.constant 0 : index
    %c0_25 = arith.constant 0 : index
    %c0_26 = arith.constant 0 : index
    %c0_27 = arith.constant 0 : index
    %27 = vector.load %arg4[%c0_24, %c0_25, %c0_26, %c0_27] : memref<3x4x16x1xf32, #tpu.memory_space<vmem>>, vector<1x1x16x1xf32>
    %28 = vector.shape_cast %27 : vector<1x1x16x1xf32> to vector<16x1xf32>
    %29 = vector.broadcast %28 : vector<16x1xf32> to vector<16x256xf32>
    %30 = arith.mulf %29, %26 : vector<16x256xf32>
    %c1 = arith.constant 1 : index
    %c0_28 = arith.constant 0 : index
    %c0_29 = arith.constant 0 : index
    %c0_30 = arith.constant 0 : index
    %31 = vector.load %arg4[%c1, %c0_28, %c0_29, %c0_30] : memref<3x4x16x1xf32, #tpu.memory_space<vmem>>, vector<1x1x16x1xf32>
    %32 = vector.shape_cast %31 : vector<1x1x16x1xf32> to vector<16x1xf32>
    %33 = vector.broadcast %32 : vector<16x1xf32> to vector<16x256xf32>
    %34 = arith.mulf %33, %24 : vector<16x256xf32>
    %35 = arith.addf %30, %34 : vector<16x256xf32>
    %c0_31 = arith.constant 0 : index
    %c0_32 = arith.constant 0 : index
    %c129 = arith.constant 129 : index
    %36 = vector.load %arg9[%c0_31, %c0_32, %c129] : memref<4x16x512xf32, #tpu.memory_space<vmem>>, vector<1x16x256xf32>
    %37 = vector.shape_cast %36 : vector<1x16x256xf32> to vector<16x256xf32>
    %c2 = arith.constant 2 : index
    %c0_33 = arith.constant 0 : index
    %c0_34 = arith.constant 0 : index
    %c0_35 = arith.constant 0 : index
    %38 = vector.load %arg4[%c2, %c0_33, %c0_34, %c0_35] : memref<3x4x16x1xf32, #tpu.memory_space<vmem>>, vector<1x1x16x1xf32>
    %39 = vector.shape_cast %38 : vector<1x1x16x1xf32> to vector<16x1xf32>
    %40 = vector.broadcast %39 : vector<16x1xf32> to vector<16x256xf32>
    %41 = arith.mulf %40, %37 : vector<16x256xf32>
    %42 = arith.addf %35, %41 : vector<16x256xf32>
    %c0_36 = arith.constant 0 : index
    %c0_37 = arith.constant 0 : index
    %c0_38 = arith.constant 0 : index
    %43 = vector.load %arg5[%c0_36, %c0_37, %c0_38] : memref<4x16x16xf32, #tpu.memory_space<vmem>>, vector<1x16x16xf32>
    %44 = vector.shape_cast %43 : vector<1x16x16xf32> to vector<16x16xf32>
    %cst_39 = arith.constant dense<0.000000e+00> : vector<16x256xf32>
    %45 = tpu.matmul %44, %24, %cst_39 {dimension_numbers = #tpu.dot_dimension_numbers<[1], [0], [0], [1], [0, 0, 1, 1], [], []>} : vector<16x16xf32>, vector<16x256xf32>, vector<16x256xf32> -> vector<16x256xf32>
    %46 = arith.addf %42, %45 : vector<16x256xf32>
    %c0_40 = arith.constant 0 : index
    %c0_41 = arith.constant 0 : index
    %c0_42 = arith.constant 0 : index
    %c0_43 = arith.constant 0 : index
    %47 = vector.load %arg6[%c0_40, %c0_41, %c0_42, %c0_43] : memref<4x4x1x1xf32, #tpu.memory_space<vmem>>, vector<1x4x1x1xf32>
    %48 = vector.shape_cast %47 : vector<1x4x1x1xf32> to vector<4x1x1xf32>
    %49 = vector.shape_cast %46 : vector<16x256xf32> to vector<1x16x256xf32>
    %50 = vector.broadcast %48 : vector<4x1x1xf32> to vector<4x16x256xf32>
    %51 = vector.broadcast %49 : vector<1x16x256xf32> to vector<4x16x256xf32>
    %52 = arith.mulf %50, %51 : vector<4x16x256xf32>
    %53 = arith.addf %22, %52 : vector<4x16x256xf32>
    %c1_44 = arith.constant 1 : index
    %c0_45 = arith.constant 0 : index
    %c128_46 = arith.constant 128 : index
    %54 = vector.load %arg9[%c1_44, %c0_45, %c128_46] : memref<4x16x512xf32, #tpu.memory_space<vmem>>, vector<1x16x256xf32>
    %55 = vector.shape_cast %54 : vector<1x16x256xf32> to vector<16x256xf32>
    %c1_47 = arith.constant 1 : index
    %c0_48 = arith.constant 0 : index
    %c127_49 = arith.constant 127 : index
    %56 = vector.load %arg9[%c1_47, %c0_48, %c127_49] : memref<4x16x512xf32, #tpu.memory_space<vmem>>, vector<1x16x256xf32>
    %57 = vector.shape_cast %56 : vector<1x16x256xf32> to vector<16x256xf32>
    %c0_50 = arith.constant 0 : index
    %c1_51 = arith.constant 1 : index
    %c0_52 = arith.constant 0 : index
    %c0_53 = arith.constant 0 : index
    %58 = vector.load %arg4[%c0_50, %c1_51, %c0_52, %c0_53] : memref<3x4x16x1xf32, #tpu.memory_space<vmem>>, vector<1x1x16x1xf32>
    %59 = vector.shape_cast %58 : vector<1x1x16x1xf32> to vector<16x1xf32>
    %60 = vector.broadcast %59 : vector<16x1xf32> to vector<16x256xf32>
    %61 = arith.mulf %60, %57 : vector<16x256xf32>
    %c1_54 = arith.constant 1 : index
    %c1_55 = arith.constant 1 : index
    %c0_56 = arith.constant 0 : index
    %c0_57 = arith.constant 0 : index
    %62 = vector.load %arg4[%c1_54, %c1_55, %c0_56, %c0_57] : memref<3x4x16x1xf32, #tpu.memory_space<vmem>>, vector<1x1x16x1xf32>
    %63 = vector.shape_cast %62 : vector<1x1x16x1xf32> to vector<16x1xf32>
    %64 = vector.broadcast %63 : vector<16x1xf32> to vector<16x256xf32>
    %65 = arith.mulf %64, %55 : vector<16x256xf32>
    %66 = arith.addf %61, %65 : vector<16x256xf32>
    %c1_58 = arith.constant 1 : index
    %c0_59 = arith.constant 0 : index
    %c129_60 = arith.constant 129 : index
    %67 = vector.load %arg9[%c1_58, %c0_59, %c129_60] : memref<4x16x512xf32, #tpu.memory_space<vmem>>, vector<1x16x256xf32>
    %68 = vector.shape_cast %67 : vector<1x16x256xf32> to vector<16x256xf32>
    %c2_61 = arith.constant 2 : index
    %c1_62 = arith.constant 1 : index
    %c0_63 = arith.constant 0 : index
    %c0_64 = arith.constant 0 : index
    %69 = vector.load %arg4[%c2_61, %c1_62, %c0_63, %c0_64] : memref<3x4x16x1xf32, #tpu.memory_space<vmem>>, vector<1x1x16x1xf32>
    %70 = vector.shape_cast %69 : vector<1x1x16x1xf32> to vector<16x1xf32>
    %71 = vector.broadcast %70 : vector<16x1xf32> to vector<16x256xf32>
    %72 = arith.mulf %71, %68 : vector<16x256xf32>
    %73 = arith.addf %66, %72 : vector<16x256xf32>
    %c1_65 = arith.constant 1 : index
    %c0_66 = arith.constant 0 : index
    %c0_67 = arith.constant 0 : index
    %74 = vector.load %arg5[%c1_65, %c0_66, %c0_67] : memref<4x16x16xf32, #tpu.memory_space<vmem>>, vector<1x16x16xf32>
    %75 = vector.shape_cast %74 : vector<1x16x16xf32> to vector<16x16xf32>
    %cst_68 = arith.constant dense<0.000000e+00> : vector<16x256xf32>
    %76 = tpu.matmul %75, %55, %cst_68 {dimension_numbers = #tpu.dot_dimension_numbers<[1], [0], [0], [1], [0, 0, 1, 1], [], []>} : vector<16x16xf32>, vector<16x256xf32>, vector<16x256xf32> -> vector<16x256xf32>
    %77 = arith.addf %73, %76 : vector<16x256xf32>
    %c1_69 = arith.constant 1 : index
    %c0_70 = arith.constant 0 : index
    %c0_71 = arith.constant 0 : index
    %c0_72 = arith.constant 0 : index
    %78 = vector.load %arg6[%c1_69, %c0_70, %c0_71, %c0_72] : memref<4x4x1x1xf32, #tpu.memory_space<vmem>>, vector<1x4x1x1xf32>
    %79 = vector.shape_cast %78 : vector<1x4x1x1xf32> to vector<4x1x1xf32>
    %80 = vector.shape_cast %77 : vector<16x256xf32> to vector<1x16x256xf32>
    %81 = vector.broadcast %79 : vector<4x1x1xf32> to vector<4x16x256xf32>
    %82 = vector.broadcast %80 : vector<1x16x256xf32> to vector<4x16x256xf32>
    %83 = arith.mulf %81, %82 : vector<4x16x256xf32>
    %84 = arith.addf %53, %83 : vector<4x16x256xf32>
    %c2_73 = arith.constant 2 : index
    %c0_74 = arith.constant 0 : index
    %c128_75 = arith.constant 128 : index
    %85 = vector.load %arg9[%c2_73, %c0_74, %c128_75] : memref<4x16x512xf32, #tpu.memory_space<vmem>>, vector<1x16x256xf32>
    %86 = vector.shape_cast %85 : vector<1x16x256xf32> to vector<16x256xf32>
    %c2_76 = arith.constant 2 : index
    %c0_77 = arith.constant 0 : index
    %c127_78 = arith.constant 127 : index
    %87 = vector.load %arg9[%c2_76, %c0_77, %c127_78] : memref<4x16x512xf32, #tpu.memory_space<vmem>>, vector<1x16x256xf32>
    %88 = vector.shape_cast %87 : vector<1x16x256xf32> to vector<16x256xf32>
    %c0_79 = arith.constant 0 : index
    %c2_80 = arith.constant 2 : index
    %c0_81 = arith.constant 0 : index
    %c0_82 = arith.constant 0 : index
    %89 = vector.load %arg4[%c0_79, %c2_80, %c0_81, %c0_82] : memref<3x4x16x1xf32, #tpu.memory_space<vmem>>, vector<1x1x16x1xf32>
    %90 = vector.shape_cast %89 : vector<1x1x16x1xf32> to vector<16x1xf32>
    %91 = vector.broadcast %90 : vector<16x1xf32> to vector<16x256xf32>
    %92 = arith.mulf %91, %88 : vector<16x256xf32>
    %c1_83 = arith.constant 1 : index
    %c2_84 = arith.constant 2 : index
    %c0_85 = arith.constant 0 : index
    %c0_86 = arith.constant 0 : index
    %93 = vector.load %arg4[%c1_83, %c2_84, %c0_85, %c0_86] : memref<3x4x16x1xf32, #tpu.memory_space<vmem>>, vector<1x1x16x1xf32>
    %94 = vector.shape_cast %93 : vector<1x1x16x1xf32> to vector<16x1xf32>
    %95 = vector.broadcast %94 : vector<16x1xf32> to vector<16x256xf32>
    %96 = arith.mulf %95, %86 : vector<16x256xf32>
    %97 = arith.addf %92, %96 : vector<16x256xf32>
    %c2_87 = arith.constant 2 : index
    %c0_88 = arith.constant 0 : index
    %c129_89 = arith.constant 129 : index
    %98 = vector.load %arg9[%c2_87, %c0_88, %c129_89] : memref<4x16x512xf32, #tpu.memory_space<vmem>>, vector<1x16x256xf32>
    %99 = vector.shape_cast %98 : vector<1x16x256xf32> to vector<16x256xf32>
    %c2_90 = arith.constant 2 : index
    %c2_91 = arith.constant 2 : index
    %c0_92 = arith.constant 0 : index
    %c0_93 = arith.constant 0 : index
    %100 = vector.load %arg4[%c2_90, %c2_91, %c0_92, %c0_93] : memref<3x4x16x1xf32, #tpu.memory_space<vmem>>, vector<1x1x16x1xf32>
    %101 = vector.shape_cast %100 : vector<1x1x16x1xf32> to vector<16x1xf32>
    %102 = vector.broadcast %101 : vector<16x1xf32> to vector<16x256xf32>
    %103 = arith.mulf %102, %99 : vector<16x256xf32>
    %104 = arith.addf %97, %103 : vector<16x256xf32>
    %c2_94 = arith.constant 2 : index
    %c0_95 = arith.constant 0 : index
    %c0_96 = arith.constant 0 : index
    %105 = vector.load %arg5[%c2_94, %c0_95, %c0_96] : memref<4x16x16xf32, #tpu.memory_space<vmem>>, vector<1x16x16xf32>
    %106 = vector.shape_cast %105 : vector<1x16x16xf32> to vector<16x16xf32>
    %cst_97 = arith.constant dense<0.000000e+00> : vector<16x256xf32>
    %107 = tpu.matmul %106, %86, %cst_97 {dimension_numbers = #tpu.dot_dimension_numbers<[1], [0], [0], [1], [0, 0, 1, 1], [], []>} : vector<16x16xf32>, vector<16x256xf32>, vector<16x256xf32> -> vector<16x256xf32>
    %108 = arith.addf %104, %107 : vector<16x256xf32>
    %c2_98 = arith.constant 2 : index
    %c0_99 = arith.constant 0 : index
    %c0_100 = arith.constant 0 : index
    %c0_101 = arith.constant 0 : index
    %109 = vector.load %arg6[%c2_98, %c0_99, %c0_100, %c0_101] : memref<4x4x1x1xf32, #tpu.memory_space<vmem>>, vector<1x4x1x1xf32>
    %110 = vector.shape_cast %109 : vector<1x4x1x1xf32> to vector<4x1x1xf32>
    %111 = vector.shape_cast %108 : vector<16x256xf32> to vector<1x16x256xf32>
    %112 = vector.broadcast %110 : vector<4x1x1xf32> to vector<4x16x256xf32>
    %113 = vector.broadcast %111 : vector<1x16x256xf32> to vector<4x16x256xf32>
    %114 = arith.mulf %112, %113 : vector<4x16x256xf32>
    %115 = arith.addf %84, %114 : vector<4x16x256xf32>
    %c3 = arith.constant 3 : index
    %c0_102 = arith.constant 0 : index
    %c128_103 = arith.constant 128 : index
    %116 = vector.load %arg9[%c3, %c0_102, %c128_103] : memref<4x16x512xf32, #tpu.memory_space<vmem>>, vector<1x16x256xf32>
    %117 = vector.shape_cast %116 : vector<1x16x256xf32> to vector<16x256xf32>
    %c3_104 = arith.constant 3 : index
    %c0_105 = arith.constant 0 : index
    %c127_106 = arith.constant 127 : index
    %118 = vector.load %arg9[%c3_104, %c0_105, %c127_106] : memref<4x16x512xf32, #tpu.memory_space<vmem>>, vector<1x16x256xf32>
    %119 = vector.shape_cast %118 : vector<1x16x256xf32> to vector<16x256xf32>
    %c0_107 = arith.constant 0 : index
    %c3_108 = arith.constant 3 : index
    %c0_109 = arith.constant 0 : index
    %c0_110 = arith.constant 0 : index
    %120 = vector.load %arg4[%c0_107, %c3_108, %c0_109, %c0_110] : memref<3x4x16x1xf32, #tpu.memory_space<vmem>>, vector<1x1x16x1xf32>
    %121 = vector.shape_cast %120 : vector<1x1x16x1xf32> to vector<16x1xf32>
    %122 = vector.broadcast %121 : vector<16x1xf32> to vector<16x256xf32>
    %123 = arith.mulf %122, %119 : vector<16x256xf32>
    %c1_111 = arith.constant 1 : index
    %c3_112 = arith.constant 3 : index
    %c0_113 = arith.constant 0 : index
    %c0_114 = arith.constant 0 : index
    %124 = vector.load %arg4[%c1_111, %c3_112, %c0_113, %c0_114] : memref<3x4x16x1xf32, #tpu.memory_space<vmem>>, vector<1x1x16x1xf32>
    %125 = vector.shape_cast %124 : vector<1x1x16x1xf32> to vector<16x1xf32>
    %126 = vector.broadcast %125 : vector<16x1xf32> to vector<16x256xf32>
    %127 = arith.mulf %126, %117 : vector<16x256xf32>
    %128 = arith.addf %123, %127 : vector<16x256xf32>
    %c3_115 = arith.constant 3 : index
    %c0_116 = arith.constant 0 : index
    %c129_117 = arith.constant 129 : index
    %129 = vector.load %arg9[%c3_115, %c0_116, %c129_117] : memref<4x16x512xf32, #tpu.memory_space<vmem>>, vector<1x16x256xf32>
    %130 = vector.shape_cast %129 : vector<1x16x256xf32> to vector<16x256xf32>
    %c2_118 = arith.constant 2 : index
    %c3_119 = arith.constant 3 : index
    %c0_120 = arith.constant 0 : index
    %c0_121 = arith.constant 0 : index
    %131 = vector.load %arg4[%c2_118, %c3_119, %c0_120, %c0_121] : memref<3x4x16x1xf32, #tpu.memory_space<vmem>>, vector<1x1x16x1xf32>
    %132 = vector.shape_cast %131 : vector<1x1x16x1xf32> to vector<16x1xf32>
    %133 = vector.broadcast %132 : vector<16x1xf32> to vector<16x256xf32>
    %134 = arith.mulf %133, %130 : vector<16x256xf32>
    %135 = arith.addf %128, %134 : vector<16x256xf32>
    %c3_122 = arith.constant 3 : index
    %c0_123 = arith.constant 0 : index
    %c0_124 = arith.constant 0 : index
    %136 = vector.load %arg5[%c3_122, %c0_123, %c0_124] : memref<4x16x16xf32, #tpu.memory_space<vmem>>, vector<1x16x16xf32>
    %137 = vector.shape_cast %136 : vector<1x16x16xf32> to vector<16x16xf32>
    %cst_125 = arith.constant dense<0.000000e+00> : vector<16x256xf32>
    %138 = tpu.matmul %137, %117, %cst_125 {dimension_numbers = #tpu.dot_dimension_numbers<[1], [0], [0], [1], [0, 0, 1, 1], [], []>} : vector<16x16xf32>, vector<16x256xf32>, vector<16x256xf32> -> vector<16x256xf32>
    %139 = arith.addf %135, %138 : vector<16x256xf32>
    %c3_126 = arith.constant 3 : index
    %c0_127 = arith.constant 0 : index
    %c0_128 = arith.constant 0 : index
    %c0_129 = arith.constant 0 : index
    %140 = vector.load %arg6[%c3_126, %c0_127, %c0_128, %c0_129] : memref<4x4x1x1xf32, #tpu.memory_space<vmem>>, vector<1x4x1x1xf32>
    %141 = vector.shape_cast %140 : vector<1x4x1x1xf32> to vector<4x1x1xf32>
    %142 = vector.shape_cast %139 : vector<16x256xf32> to vector<1x16x256xf32>
    %143 = vector.broadcast %141 : vector<4x1x1xf32> to vector<4x16x256xf32>
    %144 = vector.broadcast %142 : vector<1x16x256xf32> to vector<4x16x256xf32>
    %145 = arith.mulf %143, %144 : vector<4x16x256xf32>
    %146 = arith.addf %115, %145 : vector<4x16x256xf32>
    %cst_130 = arith.constant 0.000000e+00 : f32
    %147 = vector.broadcast %cst_130 : f32 to vector<4x16x256xf32>
    %148 = arith.subf %147, %146 : vector<4x16x256xf32>
    %149 = math.exp %148 : vector<4x16x256xf32>
    %cst_131 = arith.constant 1.000000e+00 : f32
    %150 = vector.broadcast %cst_131 : f32 to vector<4x16x256xf32>
    %151 = arith.addf %150, %149 : vector<4x16x256xf32>
    %152 = tpu.reciprocal %151 {approx = true} : vector<4x16x256xf32> -> vector<4x16x256xf32>
    %153 = arith.mulf %146, %152 : vector<4x16x256xf32>
    %c0_132 = arith.constant 0 : index
    %c0_133 = arith.constant 0 : index
    %c128_134 = arith.constant 128 : index
    %154 = vector.load %arg9[%c0_132, %c0_133, %c128_134] : memref<4x16x512xf32, #tpu.memory_space<vmem>>, vector<4x16x256xf32>
    %155 = arith.addf %153, %154 : vector<4x16x256xf32>
    %cst_135 = arith.constant 0.000000e+00 : f32
    %156 = vector.broadcast %cst_135 : f32 to vector<4x16x256xf32>
    %157 = arith.maximumf %155, %156 : vector<4x16x256xf32>
    %c0_136 = arith.constant 0 : index
    %c0_137 = arith.constant 0 : index
    %c0_138 = arith.constant 0 : index
    %c0_139 = arith.constant 0 : index
    %158 = vector.load %arg8[%c0_136, %c0_137, %c0_138, %c0_139] : memref<1x4x16x256xf32, #tpu.memory_space<vmem>>, vector<1x4x16x256xf32>
    %159 = vector.shape_cast %158 : vector<1x4x16x256xf32> to vector<4x16x256xf32>
    %160 = vector.shape_cast %157 : vector<4x16x256xf32> to vector<1x4x16x256xf32>
    tpu.vector_store %arg8[%c0_136, %c0_137, %c0_138, %c0_139], %160 {strides = array<i32>} : memref<1x4x16x256xf32, #tpu.memory_space<vmem>>, vector<1x4x16x256xf32>,
    return
  }
  func.func @transform_0(%arg0: i32, %arg1: i32) -> (i32, i32, i32, i32) {
    %c0_i32 = arith.constant 0 : i32
    %c0_i32_0 = arith.constant 0 : i32
    %c0_i32_1 = arith.constant 0 : i32
    return %arg0, %c0_i32, %c0_i32_0, %arg1 : i32, i32, i32, i32
  }
  func.func @transform_1(%arg0: i32, %arg1: i32) -> (i32, i32, i32, i32, i32) {
    %c0_i32 = arith.constant 0 : i32
    %c0_i32_0 = arith.constant 0 : i32
    %c0_i32_1 = arith.constant 0 : i32
    %c0_i32_2 = arith.constant 0 : i32
    return %arg0, %arg1, %c0_i32, %c0_i32_0, %c0_i32_1 : i32, i32, i32, i32, i32
  }
  func.func @transform_2(%arg0: i32, %arg1: i32) -> (i32, i32, i32, i32) {
    %c0_i32 = arith.constant 0 : i32
    %c0_i32_0 = arith.constant 0 : i32
    %c0_i32_1 = arith.constant 0 : i32
    %c0_i32_2 = arith.constant 0 : i32
    %c0_i32_3 = arith.constant 0 : i32
    return %c0_i32, %c0_i32_0, %c0_i32_1, %c0_i32_2 : i32, i32, i32, i32
  }
  func.func @transform_3(%arg0: i32, %arg1: i32) -> (i32, i32, i32) {
    %c0_i32 = arith.constant 0 : i32
    %c0_i32_0 = arith.constant 0 : i32
    %c0_i32_1 = arith.constant 0 : i32
    %c0_i32_2 = arith.constant 0 : i32
    return %c0_i32, %c0_i32_0, %c0_i32_1 : i32, i32, i32
  }
  func.func @transform_4(%arg0: i32, %arg1: i32) -> (i32, i32, i32, i32) {
    %c0_i32 = arith.constant 0 : i32
    %c0_i32_0 = arith.constant 0 : i32
    %c0_i32_1 = arith.constant 0 : i32
    %c0_i32_2 = arith.constant 0 : i32
    %c0_i32_3 = arith.constant 0 : i32
    return %c0_i32, %c0_i32_0, %c0_i32_1, %c0_i32_2 : i32, i32, i32, i32
  }
  func.func @transform_5(%arg0: i32, %arg1: i32) -> (i32, i32, i32) {
    %c0_i32 = arith.constant 0 : i32
    %c0_i32_0 = arith.constant 0 : i32
    %c0_i32_1 = arith.constant 0 : i32
    %c0_i32_2 = arith.constant 0 : i32
    return %c0_i32, %c0_i32_0, %c0_i32_1 : i32, i32, i32
  }
  func.func @transform_6(%arg0: i32, %arg1: i32) -> (i32, i32, i32, i32) {
    %c0_i32 = arith.constant 0 : i32
    %c0_i32_0 = arith.constant 0 : i32
    %c0_i32_1 = arith.constant 0 : i32
    return %arg0, %c0_i32, %c0_i32_0, %arg1 : i32, i32, i32, i32
  }
}

</mosaic_0001>

<bundles_post_ra>
// kernel: tpu_custom_call.1
= control target key start
LH: loop header
LB: loop body
LE: loop exit
PB: predicated region body
PF: predicated region fallthrough
CT: control target
= control target key end

     0   :  { %11 = vsyncpa [#allocation4], 0  ;;  %s3962_s0 = inlined_call_operand.vmem [shape: f32[2,4,16,200], index: 0, kind: input, shape index: {}]   ;;  %s3963_s1 = inlined_call_operand.vmem [shape: f32[2,1,4,16,2], index: 1, kind: input, shape index: {}]   ;;  %s3964_s2 = inlined_call_operand.vmem [shape: f32[3,4,16,1], index: 2, kind: input, shape index: {}]   ;;  %s3965_s3 = inlined_call_operand.vmem [shape: f32[4,16,16], index: 3, kind: input, shape index: {}]   ;;  %s3966_s4 = inlined_call_operand.vmem [shape: f32[4,4,1,1], index: 4, kind: input, shape index: {}]   ;;  %s3967_s5 = inlined_call_operand.vmem [shape: f32[4,1,1], index: 5, kind: input, shape index: {}]   ;;  %s3968_s6 = inlined_call_operand.hbm [shape: f32[2,4,16,200], index: 6, kind: output, shape index: {}]  }
   0x1   :  { %13 = vsyncpa [#allocation4 + $0x1], 0  ;;  %s2714_s21 = smov 0   ;;  %s2716_s22 = smov 0  }
   0x2   :  { %s2718_s23 = smov 0   ;;  %s2720_s24 = smov 0  }
   0x3   :  { %s2722_s25 = smov 0   ;;  %s2724_s26 = smov 0  }
   0x4 LB: > { %s2317_s27 = sadd.s32 4294967295, %s2669_s26   ;;  %s2318_s28 = sadd.s32 4294967294, %s2669_s26   ;;  %s2669_s26 = sphi %s2724_s26, %s19_s26   ;;  %s2665_s25 = sphi %s2722_s25, %s4036_s25   ;;  %s2661_s24 = sphi %s2720_s24, %s4035_s24   ;;  %s2657_s23 = sphi %s2718_s23, %s4034_s23   ;;  %s2653_s22 = sphi %s2716_s22, %s4033_s22   ;;  %s2649_s21 = sphi %s2714_s21, %s4032_s21  }
   0x5   : > { %s31_s29 = sadd.s32 1, %s2665_s25  ;;  %s180_s30 = sadd.s32 1, %s2657_s23 }
   0x6   : > { %p33_p0 = scmp.ge.s32.totalorder %s31_s29, 2  ;;  %p190_p1 = scmp.ne.s32.totalorder %s2657_s23, %s2653_s22 }
   0x7   : > { %p191_p2 = scmp.eq.s32.totalorder %s2317_s27, 1  ;;  %p196_p3 = scmp.ne.s32.totalorder %s2653_s22, %s2649_s21 }
   0x8   : > { %s4038_s29 = smov (%p33_p0, %s31_s29), 0  ;;  %p197_p5 = scmp.eq.s32.totalorder %s2318_s28, 1 }
   0x9   : > { %p2754_p4 = por %p191_p2, %p190_p1  ;;  %s175_s8 = ssub.s32 %s2665_s25, %s4038_s29 }
   0xa   : > { %p2321_p6 = scmp.ge.s32.totalorder %s2669_s26, 1  ;;  %p178_p7 = scmp.eq.s32.totalorder %s175_s8, 0 }
   0xb   : > { %p2761_p8 = por %p197_p5, %p196_p3  ;;  %p252_p9 = scmp.lt.s32.totalorder %s2669_s26, 3 }
   0xc   : > { %s2767_s10 = scalar_select %p178_p7, %s2657_s23, %s180_s30  }
   0xd   : > { %p253_p10 = pnand %p2321_p6, %p252_p9 }
   0xf   : > { %256 = sbr.rel (%p253_p10) target bundleno = 692 (0x2b4), region = 44 }
  0x16   : > { %p296_p11 = scmp.lt.s32.totalorder %s2661_s24, 1  ;;  %v332_v0 = vlaneseq  ;;  %v2671_v1 = vmov 0   ;;  %v2672_v3 = vmov 0.0   ;;  %s2673_s20 = smov 127   ;;  %v606_v33 = vld [vmem:[%s3965_s3] sm:$0xff]  ;;  %vm608_vm2 = vcmask 130048  }
  0x17   : > { %2482 = vset.pattern.permute.xlu1 %v2671_v1  ;;  %2481 = vset.pattern.permute.xlu0 %v2671_v1  ;;  %v2347_v34 = vld [vmem:[%s3965_s3 + $0x10] sm:$0xff]  ;;  %v2328_v45 = vld [vmem:[%s3967_s5 + $0x1] ss:$0 sm:$0xff]  ;;  %v2327_v46 = vld [vmem:[%s3967_s5] ss:$0 sm:$0xff]  ;;  %vm416_vm3 = vcmask 1048568  }
  0x18   : > { %s297_s11 = scalar_select %p296_p11, %s2661_s24, 1  ;;  %v333_v2 = vand.u32 127, %v332_v0  ;;  %679 = vmatprep.mubr.f32.mxu0 %v2672_v3  ;;  %1007 = vmatprep.mubr.f32.mxu1 %v2672_v3  ;;  %v607_v47 = vld [vmem:[%s3965_s3 + $0x8] sm:$0xff]  ;;  %v2348_v49 = vld [vmem:[%s3965_s3 + $0x18] sm:$0xff]  ;;  %v2329_v51 = vld [vmem:[%s3967_s5 + $0x2] ss:$0 sm:$0xff] }
  0x19   : > { %v2330_v52 = vld [vmem:[%s3967_s5 + $0x3] ss:$0 sm:$0xff]  ;;  %v2383_v55 = vld [vmem:[%s3965_s3 + $0x30] sm:$0xff]  ;;  %v485_v57 = vld [vmem:[%s3964_s2 + $0x8] sm:$0xff]  ;;  %vm425_vm4 = vcmask 7168   ;;  %s2674_s17 = smov 126  }
  0x1a   : > { %s2401_s12 = sshll.u32 %s297_s11, 6  ;;  %s2400_s13 = sshll.u32 %s297_s11, 7  ;;  %v334_v4 = vadd.s32 128, %v333_v2  ;;  %v2365_v54 = vld [vmem:[%s3965_s3 + $0x20] sm:$0xff]  ;;  %v2366_v58 = vld [vmem:[%s3965_s3 + $0x28] sm:$0xff]  ;;  %v2384_v59 = vld [vmem:[%s3965_s3 + $0x38] sm:$0xff] }
  0x1b   : > { %s2776_s16 = scalar_lea.vmem %s3963_s1, %s2401_s12  ;;  %s2782_s19 = scalar_lea.vmem %s3962_s0, %s2400_s13  ;;  %v484_v56 = vld [vmem:[%s3964_s2] sm:$0xff]  ;;  %v2332_v61 = vld [vmem:[%s3964_s2 + $0x48] sm:$0xff]  ;;  %v2381_v24 = vld [vmem:[%s3964_s2 + $0xb0] sm:$0xff]  ;;  %vm589_vm5 = vcmask 1031168   ;;  %vm531_vm6 = vcmask 1039360  }
  0x1c   : > { %v378_v5 = vld [vmem:[%s2776_s16 + $0x10] sm:$0xff]  ;;  %v376_v6 = vld [vmem:[%s2776_s16] sm:$0xff]  ;;  %vm339_vm0 = vcmp.lt.s32.totalorder %v334_v4, 200  ;;  %v379_v7 = vld [vmem:[%s2776_s16 + $0x18] sm:$0xff]  ;;  %s2402_s11 = sshll.u32 %s2661_s24, 11  ;;  %s2676_s18 = smov [#allocation3]  }
  0x1d   : > { %396 = vrot.lane.b32.xlu1 %v378_v5, %s2673_s20  ;;  %392 = vrot.lane.b32.xlu0 %v376_v6, %s2673_s20  ;;  %v377_v8 = vld [vmem:[%s2776_s16 + $0x8] sm:$0xff]  ;;  %v318_v10 = vld [vmem:[%s2782_s19 + $0x18] sm:$0xff]  ;;  %vm2825_vm1 = vmpackc.low %vm339_vm0, %vm339_vm0  ;;  %s3908_s15 = scalar_lea.hbm %s3968_s6, %s2402_s11 }
  0x1e   : > { %v316_v9 = vld [vmem:[%s2782_s19 + $0x8] sm:$0xff]  ;;  %v2795_v12 = vld [vmem:[%s2782_s19] sm:$0xff]  ;;  %v2798_v13 = vld [vmem:[%s2782_s19 + $0x10] sm:$0xff]  ;;  %v2804_v15 = vsel %vm339_vm0, %v318_v10, 0.0 }
  0x1f   : > { %v2792_v11 = vsel %vm339_vm0, %v316_v9, 0.0  ;;  %v381_v14 = vld [vmem:[%s2776_s16 + $0x28] sm:$0xff]  ;;  %v380_v16 = vld [vmem:[%s2776_s16 + $0x20] sm:$0xff]  ;;  %v2405_v17 = vpack.c.bf16 %v2798_v13, %v2795_v12  ;;  %v322_v19 = vld [vmem:[%s2782_s19 + $0x38] sm:$0xff]  ;;  %v2580_v25 = vpack.c.bf16 %v318_v10, %v316_v9 }
  0x20   : > { %v320_v18 = vld [vmem:[%s2782_s19 + $0x28] sm:$0xff]  ;;  %v2815_v21 = vsel %vm339_vm0, %v322_v19, 0.0  ;;  %v2818_v22 = vld [vmem:[%s2782_s19 + $0x20] sm:$0xff]  ;;  %v2821_v23 = vld [vmem:[%s2782_s19 + $0x30] sm:$0xff] }
  0x21   : > { %398 = vrot.lane.b32.xlu1 %v379_v7, %s2673_s20  ;;  %394 = vrot.lane.b32.xlu0 %v377_v8, %s2673_s20  ;;  %v2812_v20 = vsel %vm339_vm0, %v320_v18, 0.0  ;;  %v2409_v26 = vpack.c.bf16 %v2821_v23, %v2818_v22  ;;  %v383_v27 = vld [vmem:[%s2776_s16 + $0x38] sm:$0xff]  ;;  %v382_v28 = vld [vmem:[%s2776_s16 + $0x30] sm:$0xff]  ;;  %v2583_v29 = vpack.c.bf16 %v322_v19, %v320_v18 }
  0x22   : > { %2581 = vmatprep.subr.msk.bf16.mxu0 %vm2825_vm1, %v2580_v25  ;;  %v324_v30 = vld [vmem:[%s2782_s19 + $0x48] sm:$0xff]  ;;  %v326_v31 = vld [vmem:[%s2782_s19 + $0x58] sm:$0xff]  ;;  %v2842_v32 = vld [vmem:[%s2782_s19 + $0x40] sm:$0xff] }
  0x23   : > { %2406 = vmatpush1.bf16.msra.mxu0 %v2405_v17  ;;  %2584 = vmatprep.subr.msk.bf16.mxu1 %vm2825_vm1, %v2583_v29  ;;  %v2851_v35 = vsel %vm339_vm0, %v324_v30, 0.0  ;;  %v2854_v36 = vsel %vm339_vm0, %v326_v31, 0.0  ;;  %v2857_v37 = vld [vmem:[%s2782_s19 + $0x50] sm:$0xff]  ;;  %v328_v39 = vld [vmem:[%s2782_s19 + $0x68] sm:$0xff]  ;;  %v330_v40 = vld [vmem:[%s2782_s19 + $0x78] sm:$0xff]  ;;  %v2586_v48 = vpack.c.bf16 %v326_v31, %v324_v30 }
  0x24   : > { %2410 = vmatpush1.bf16.msra.mxu1 %v2409_v26  ;;  %v2413_v38 = vpack.c.bf16 %v2857_v37, %v2842_v32  ;;  %v2866_v41 = vsel %vm339_vm0, %v328_v39, 0.0  ;;  %v2869_v42 = vsel %vm339_vm0, %v330_v40, 0.0  ;;  %v2872_v43 = vld [vmem:[%s2782_s19 + $0x60] sm:$0xff]  ;;  %v2875_v44 = vld [vmem:[%s2782_s19 + $0x70] sm:$0xff]  ;;  %v2589_v53 = vpack.c.bf16 %v330_v40, %v328_v39  ;;  %v2334_v63 = vld [vmem:[%s3964_s2 + $0x88] sm:$0xff]  ;;  %s2595_s19 = sshll.u32 %s2676_s18, 4  ;;  %s2596_s19 = int_to_ptr.vmem [resolvable:$false] %s2595_s19 }
  0x25   : > { %402 = vrot.lane.b32.xlu1 %v381_v14, %s2673_s20  ;;  %400 = vrot.lane.b32.xlu0 %v380_v16, %s2673_s20  ;;  %v2417_v50 = vpack.c.bf16 %v2875_v44, %v2872_v43  ;;  %v2331_v60 = vld [vmem:[%s3964_s2 + $0x40] sm:$0xff]  ;;  %v2341_v4 = vld [vmem:[%s3964_s2 + $0x10] sm:$0xff]  ;;  %s2597_s27 = scalar_lea.vmem %s2596_s19, 4096 }
  0x26   : > { %2335 = vmatmul.mubr.msk.f32.vlgmr.msra.gmra.mrb[0].mxu0 %vm608_vm2, %v606_v33  ;;  %2587 = vmatprep.subr.msk.bf16.mxu0 %vm2825_vm1, %v2586_v48  ;;  %v2333_v62 = vld [vmem:[%s3964_s2 + $0x80] sm:$0xff]  ;;  %v2342_v5 = vld [vmem:[%s3964_s2 + $0x18] sm:$0xff]  ;;  %v2343_v6 = vld [vmem:[%s3964_s2 + $0x50] sm:$0xff] }
  0x27   : > { %2349 = vmatmul.mubr.msk.f32.vlgmr.msra.gmra.mrb[0].mxu1 %vm608_vm2, %v2347_v34  ;;  %685 = vmatprep.mubr.f32.mxu0 %v2672_v3  ;;  %v2337_v0 = vld [vmem:[%s3966_s4] ss:$0 sm:$0xff]  ;;  %v2338_v1 = vld [vmem:[%s3966_s4 + $0x1] ss:$0 sm:$0xff]  ;;  %v2339_v2 = vld [vmem:[%s3966_s4 + $0x2] ss:$0 sm:$0xff] }
  0x28   : > { %2414 = vmatpush1.bf16.msra.mxu0 %v2413_v38  ;;  %1013 = vmatprep.mubr.f32.mxu1 %v2672_v3  ;;  %v2344_v7 = vld [vmem:[%s3964_s2 + $0x58] sm:$0xff]  ;;  %v2345_v8 = vld [vmem:[%s3964_s2 + $0x90] sm:$0xff]  ;;  %v2361_v10 = vld [vmem:[%s3964_s2 + $0x60] sm:$0xff] }
  0x29   : > { %406 = vrot.lane.b32.xlu1 %v383_v27, %s2673_s20  ;;  %404 = vrot.lane.b32.xlu0 %v382_v28, %s2673_s20  ;;  %v2346_v9 = vld [vmem:[%s3964_s2 + $0x98] sm:$0xff]  ;;  %v2362_v14 = vld [vmem:[%s3964_s2 + $0x68] sm:$0xff] }
  0x2a   : > { %2336 = vmatmul.mubr.msk.f32.gmra.mrb[2].mxu0 %vm608_vm2, %v607_v47  ;;  %2590 = vmatprep.subr.msk.bf16.mxu1 %vm2825_vm1, %v2589_v53  ;;  %v2363_v16 = vld [vmem:[%s3964_s2 + $0xa0] sm:$0xff]  ;;  %v2364_v17 = vld [vmem:[%s3964_s2 + $0xa8] sm:$0xff]  ;;  %v2379_v18 = vld [vmem:[%s3964_s2 + $0x70] sm:$0xff] }
  0x2b   : > { %2350 = vmatmul.mubr.msk.f32.gmra.mrb[2].mxu1 %vm608_vm2, %v2348_v49  ;;  %1336 = vmatprep.mubr.f32.mxu0 %v2672_v3  ;;  %v2380_v19 = vld [vmem:[%s3964_s2 + $0x78] sm:$0xff]  ;;  %v2355_v26 = vld [vmem:[%s3966_s4 + $0x4] ss:$0 sm:$0xff]  ;;  %v2356_v27 = vld [vmem:[%s3966_s4 + $0x5] ss:$0 sm:$0xff] }
  0x2c   : > { %2418 = vmatpush1.bf16.msra.mxu1 %v2417_v50  ;;  %1665 = vmatprep.mubr.f32.mxu1 %v2672_v3  ;;  %v2382_v25 = vld [vmem:[%s3964_s2 + $0xb8] sm:$0xff]  ;;  %v2357_v28 = vld [vmem:[%s3966_s4 + $0x6] ss:$0 sm:$0xff]  ;;  %v2358_v29 = vld [vmem:[%s3966_s4 + $0x7] ss:$0 sm:$0xff] }
  0x2d   : > { %463 = vperm.xlu1 %2482, %v2328_v45   ;;  %459 = vperm.xlu0 %2481, %v2327_v46   ;;  %v2359_v30 = vld [vmem:[%s3964_s2 + $0x20] sm:$0xff]  ;;  %v2360_v31 = vld [vmem:[%s3964_s2 + $0x28] sm:$0xff]  ;;  %v2378_v33 = vld [vmem:[%s3964_s2 + $0x38] sm:$0xff] }
  0x2e   : > { %2367 = vmatmul.mubr.msk.f32.vlgmr.msra.gmra.mrb[4].mxu0 %vm608_vm2, %v2365_v54  ;;  %v2377_v34 = vld [vmem:[%s3964_s2 + $0x30] sm:$0xff] }
  0x2f   : > { %2385 = vmatmul.mubr.msk.f32.vlgmr.msra.gmra.mrb[4].mxu1 %vm608_vm2, %v2383_v55  ;;  %1342 = vmatprep.mubr.f32.mxu0 %v2672_v3 }
  0x30   : > { %1671 = vmatprep.mubr.f32.mxu1 %v2672_v3  ;;  %v2340_v3 = vld [vmem:[%s3966_s4 + $0x3] ss:$0 sm:$0xff] }
  0x31   : > { %467 = vperm.xlu1 %2482, %v2329_v51   ;;  %471 = vperm.xlu0 %2481, %v2330_v52  }
  0x32   : > { %2368 = vmatmul.mubr.msk.f32.gmra.mrb[6].mxu0 %vm608_vm2, %v2366_v58 }
  0x33   : > { %2386 = vmatmul.mubr.msk.f32.gmra.mrb[6].mxu1 %vm608_vm2, %v2384_v59 }
  0x35   : > { %488 = vperm.xlu1 %2482, %v484_v56   ;;  %493 = vperm.xlu0 %2481, %v485_v57  }
  0x39   : > { %507 = vperm.xlu1 %2482, %v2331_v60   ;;  %512 = vperm.xlu0 %2481, %v2332_v61  }
  0x3d   : > { %557 = vperm.xlu1 %2482, %v2333_v62   ;;  %562 = vperm.xlu0 %2481, %v2334_v63  }
  0x41   : > { %743 = vperm.xlu1 %2482, %v2337_v0   ;;  %747 = vperm.xlu0 %2481, %v2338_v1  }
  0x45   : > { %751 = vperm.xlu1 %2482, %v2339_v2   ;;  %755 = vperm.xlu0 %2481, %v2340_v3  }
  0x49   : > { %818 = vperm.xlu1 %2482, %v2341_v4   ;;  %823 = vperm.xlu0 %2481, %v2342_v5  }
  0x4d   : > { %837 = vperm.xlu1 %2482, %v2343_v6   ;;  %842 = vperm.xlu0 %2481, %v2344_v7  }
  0x51   : > { %886 = vperm.xlu1 %2482, %v2345_v8   ;;  %891 = vperm.xlu0 %2481, %v2346_v9  }
  0x55   : > { %1166 = vperm.xlu1 %2482, %v2361_v10   ;;  %1171 = vperm.xlu0 %2481, %v2362_v14  }
  0x59   : > { %1215 = vperm.xlu1 %2482, %v2363_v16   ;;  %1220 = vperm.xlu0 %2481, %v2364_v17  }
  0x5d   : > { %1495 = vperm.xlu1 %2482, %v2379_v18   ;;  %1500 = vperm.xlu0 %2481, %v2380_v19  }
  0x61   : > { %1544 = vperm.xlu1 %2482, %v2381_v24   ;;  %1549 = vperm.xlu0 %2481, %v2382_v25  }
  0x65   : > { %1072 = vperm.xlu1 %2482, %v2355_v26   ;;  %1076 = vperm.xlu0 %2481, %v2356_v27  }
  0x69   : > { %1080 = vperm.xlu1 %2482, %v2357_v28   ;;  %1084 = vperm.xlu0 %2481, %v2358_v29  }
  0x6d   : > { %1147 = vperm.xlu1 %2482, %v2359_v30   ;;  %1152 = vperm.xlu0 %2481, %v2360_v31  }
  0x71   : > { %1481 = vperm.xlu1 %2482, %v2378_v33   ;;  %1476 = vperm.xlu0 %2481, %v2377_v34  }
  0x8f   : > { %v397_v38 = vpop.permute.xlu1 %396  ;;  %v393_v39 = vpop.permute.xlu0 %392 }
  0x90   : > { %419 = vst.msk [vmem:[#allocation2 + $0x40] sm:$0xff] %vm416_vm3, %v397_v38  ;;  %417 = vst.msk [vmem:[#allocation2] sm:$0xff] %vm416_vm3, %v393_v39 }
  0x91   : > { %428 = vst.msk [vmem:[#allocation2 + $0x58] sm:$0xff] %vm425_vm4, %v397_v38  ;;  %426 = vst.msk [vmem:[#allocation2 + $0x18] sm:$0xff] %vm425_vm4, %v393_v39 }
  0x93   : > { %v399_v40 = vpop.permute.xlu1 %398  ;;  %v395_v45 = vpop.permute.xlu0 %394 }
  0x94   : > { %420 = vst.msk [vmem:[#allocation2 + $0x60] sm:$0xff] %vm416_vm3, %v399_v40  ;;  %418 = vst.msk [vmem:[#allocation2 + $0x20] sm:$0xff] %vm416_vm3, %v395_v45 }
  0x95   : > { %429 = vst.msk [vmem:[#allocation2 + $0x78] sm:$0xff] %vm425_vm4, %v399_v40  ;;  %427 = vst.msk [vmem:[#allocation2 + $0x38] sm:$0xff] %vm425_vm4, %v395_v45 }
  0x97   : > { %v403_v46 = vpop.permute.xlu1 %402  ;;  %v401_v47 = vpop.permute.xlu0 %400 }
  0x98   : > { %422 = vst.msk [vmem:[#allocation2 + $0xa0] sm:$0xff] %vm416_vm3, %v403_v46  ;;  %421 = vst.msk [vmem:[#allocation2 + $0x80] sm:$0xff] %vm416_vm3, %v401_v47  ;;  %v548_v6 = vld [vmem:[#allocation2 + $0x18] sm:$0xff] }
  0x99   : > { %431 = vst.msk [vmem:[#allocation2 + $0xb8] sm:$0xff] %vm425_vm4, %v403_v46  ;;  %430 = vst.msk [vmem:[#allocation2 + $0x98] sm:$0xff] %vm425_vm4, %v401_v47  ;;  %v877_v33 = vld [vmem:[#allocation2 + $0x58] sm:$0xff] }
  0x9b   : > { %v407_v48 = vpop.permute.xlu1 %406  ;;  %v405_v49 = vpop.permute.xlu0 %404 }
  0x9c   : > { %424 = vst.msk [vmem:[#allocation2 + $0xe0] sm:$0xff] %vm416_vm3, %v407_v48  ;;  %423 = vst.msk [vmem:[#allocation2 + $0xc0] sm:$0xff] %vm416_vm3, %v405_v49  ;;  %v551_v14 = vld [vmem:[#allocation2 + $0x38] sm:$0xff] }
  0x9d   : > { %433 = vst.msk [vmem:[#allocation2 + $0xf8] sm:$0xff] %vm425_vm4, %v407_v48  ;;  %432 = vst.msk [vmem:[#allocation2 + $0xd8] sm:$0xff] %vm425_vm4, %v405_v49  ;;  %v880_v39 = vld [vmem:[#allocation2 + $0x78] sm:$0xff] }
  0xac   : > { %v3039_v50 = vpop.permute.xlu1 %463  ;;  %v3041_v51 = vpop.permute.xlu0 %459 }
  0xb0   : > { %v3043_v52 = vpop.permute.xlu1 %467  ;;  %v3045_v53 = vpop.permute.xlu0 %471 }
  0xb1   : > { %3990 = vst [vmem:[#allocation6_spill] sm:$0xff] %v3043_v52  ;;  %3991 = vst [vmem:[#allocation7_spill] sm:$0xff] %v3045_v53 }
  0xb4   : > { %v3047_v54 = vpop.permute.xlu1 %488  ;;  %v3049_v55 = vpop.permute.xlu0 %493 }
  0xb8   : > { %v508_v56 = vpop.permute.xlu1 %507  ;;  %v513_v57 = vpop.permute.xlu0 %512 }
  0xb9   : > { %v515_v58 = vmul.f32 %v508_v56, %v2795_v12  ;;  %v516_v59 = vmul.f32 %v508_v56, %v2792_v11  ;;  %v517_v62 = vmul.f32 %v513_v57, %v2798_v13  ;;  %v518_v63 = vmul.f32 %v513_v57, %v2804_v15 }
  0xbb   : > { %525 = vrot.lane.b32.xlu0 %v516_v59, %s2673_s20  ;;  %523 = vrot.lane.b32.xlu1 %v515_v58, %s2673_s20  ;;  %v2374_v58 = vld [vmem:[%s3966_s4 + $0x9] ss:$0 sm:$0xff]  ;;  %v2373_v59 = vld [vmem:[%s3966_s4 + $0x8] ss:$0 sm:$0xff] }
  0xbc   : > { %v558_v60 = vpop.permute.xlu1 %557  ;;  %v563_v61 = vpop.permute.xlu0 %562 }
  0xbd   : > { %v566_v2 = vmul.f32 %v558_v60, %v2792_v11  ;;  %v565_v3 = vmul.f32 %v558_v60, %v2795_v12  ;;  %v568_v7 = vmul.f32 %v563_v61, %v2798_v13  ;;  %v567_v8 = vmul.f32 %v558_v60, %v548_v6  ;;  %v2376_v60 = vld [vmem:[%s3966_s4 + $0xb] ss:$0 sm:$0xff]  ;;  %v1206_v6 = vld [vmem:[#allocation2 + $0x98] sm:$0xff] }
  0xbe   : > { %v570_v16 = vmul.f32 %v563_v61, %v551_v14  ;;  %v569_v17 = vmul.f32 %v563_v61, %v2804_v15  ;;  %v2375_v61 = vld [vmem:[%s3966_s4 + $0xa] ss:$0 sm:$0xff]  ;;  %v1209_v14 = vld [vmem:[#allocation2 + $0xb8] sm:$0xff] }
  0xbf   : > { %529 = vrot.lane.b32.xlu0 %v518_v63, %s2673_s20  ;;  %527 = vrot.lane.b32.xlu1 %v517_v62, %s2673_s20 }
  0xc0   : > { %v3059_v0 = vpop.permute.xlu1 %743  ;;  %v3061_v1 = vpop.permute.xlu0 %747 }
  0xc3   : > { %579 = vrot.lane.b32.xlu0 %v566_v2, %s2674_s17  ;;  %577 = vrot.lane.b32.xlu1 %v565_v3, %s2674_s17 }
  0xc4   : > { %v3067_v4 = vpop.permute.xlu1 %751  ;;  %v3069_v5 = vpop.permute.xlu0 %755 }
  0xc5   : > { %3992 = vst [vmem:[#allocation8_spill] sm:$0xff] %v3067_v4  ;;  %3993 = vst [vmem:[#allocation9_spill] sm:$0xff] %v3069_v5 }
  0xc7   : > { %583 = vrot.lane.b32.xlu0 %v568_v7, %s2674_s17  ;;  %581 = vrot.lane.b32.xlu1 %v567_v8, %s2674_s17 }
  0xc8   : > { %v3074_v9 = vpop.permute.xlu1 %818  ;;  %v3076_v10 = vpop.permute.xlu0 %823 }
  0xcb   : > { %587 = vrot.lane.b32.xlu0 %v570_v16, %s2674_s17  ;;  %585 = vrot.lane.b32.xlu1 %v569_v17, %s2674_s17 }
  0xcc   : > { %v838_v18 = vpop.permute.xlu1 %837  ;;  %v843_v25 = vpop.permute.xlu0 %842 }
  0xcd   : > { %v845_v19 = vmul.f32 %v838_v18, %v2818_v22  ;;  %v846_v24 = vmul.f32 %v838_v18, %v2812_v20  ;;  %v847_v26 = vmul.f32 %v843_v25, %v2821_v23  ;;  %v848_v27 = vmul.f32 %v843_v25, %v2815_v21 }
  0xcf   : > { %855 = vrot.lane.b32.xlu0 %v846_v24, %s2673_s20  ;;  %853 = vrot.lane.b32.xlu1 %v845_v19, %s2673_s20 }
  0xd0   : > { %v887_v28 = vpop.permute.xlu1 %886  ;;  %v892_v31 = vpop.permute.xlu0 %891 }
  0xd1   : > { %v895_v29 = vmul.f32 %v887_v28, %v2812_v20  ;;  %v894_v30 = vmul.f32 %v887_v28, %v2818_v22  ;;  %v897_v34 = vmul.f32 %v892_v31, %v2821_v23  ;;  %v896_v38 = vmul.f32 %v887_v28, %v877_v33 }
  0xd2   : > { %v899_v40 = vmul.f32 %v892_v31, %v880_v39  ;;  %v898_v45 = vmul.f32 %v892_v31, %v2815_v21 }
  0xd3   : > { %859 = vrot.lane.b32.xlu0 %v848_v27, %s2673_s20  ;;  %857 = vrot.lane.b32.xlu1 %v847_v26, %s2673_s20 }
  0xd4   : > { %v1167_v46 = vpop.permute.xlu1 %1166  ;;  %v1172_v49 = vpop.permute.xlu0 %1171 }
  0xd5   : > { %v1174_v47 = vmul.f32 %v1167_v46, %v2842_v32  ;;  %v1175_v48 = vmul.f32 %v1167_v46, %v2851_v35  ;;  %v1176_v56 = vmul.f32 %v1172_v49, %v2857_v37  ;;  %v1177_v57 = vmul.f32 %v1172_v49, %v2854_v36 }
  0xd7   : > { %908 = vrot.lane.b32.xlu0 %v895_v29, %s2674_s17  ;;  %906 = vrot.lane.b32.xlu1 %v894_v30, %s2674_s17 }
  0xd8   : > { %v1216_v62 = vpop.permute.xlu1 %1215  ;;  %v1221_v3 = vpop.permute.xlu0 %1220 }
  0xd9   : > { %v1224_v63 = vmul.f32 %v1216_v62, %v2851_v35  ;;  %v1223_v2 = vmul.f32 %v1216_v62, %v2842_v32  ;;  %v1226_v7 = vmul.f32 %v1221_v3, %v2857_v37  ;;  %v1225_v8 = vmul.f32 %v1216_v62, %v1206_v6  ;;  %v1535_v6 = vld [vmem:[#allocation2 + $0xd8] sm:$0xff] }
  0xda   : > { %v1228_v16 = vmul.f32 %v1221_v3, %v1209_v14  ;;  %v1227_v17 = vmul.f32 %v1221_v3, %v2854_v36  ;;  %v1538_v14 = vld [vmem:[#allocation2 + $0xf8] sm:$0xff] }
  0xdb   : > { %912 = vrot.lane.b32.xlu0 %v897_v34, %s2674_s17  ;;  %910 = vrot.lane.b32.xlu1 %v896_v38, %s2674_s17 }
  0xdc   : > { %v1496_v18 = vpop.permute.xlu1 %1495  ;;  %v1501_v19 = vpop.permute.xlu0 %1500 }
  0xdd   : > { %v1503_v24 = vmul.f32 %v1496_v18, %v2872_v43  ;;  %v1504_v25 = vmul.f32 %v1496_v18, %v2866_v41  ;;  %v1505_v30 = vmul.f32 %v1501_v19, %v2875_v44  ;;  %v1506_v31 = vmul.f32 %v1501_v19, %v2869_v42 }
  0xdf   : > { %916 = vrot.lane.b32.xlu0 %v899_v40, %s2674_s17  ;;  %914 = vrot.lane.b32.xlu1 %v898_v45, %s2674_s17  ;;  %v2392_v40 = vld [vmem:[%s3966_s4 + $0xd] ss:$0 sm:$0xff]  ;;  %v2391_v45 = vld [vmem:[%s3966_s4 + $0xc] ss:$0 sm:$0xff] }
  0xe0   : > { %v1550_v3 = vpop.permute.xlu0 %1549 }
  0xe3   : > { %1184 = vrot.lane.b32.xlu0 %v1175_v48, %s2673_s20  ;;  %1182 = vrot.lane.b32.xlu1 %v1174_v47, %s2673_s20 }
  0xe4   : > { %v3159_v19 = vpop.permute.xlu0 %1076 }
  0xe7   : > { %1188 = vrot.lane.b32.xlu0 %v1177_v57, %s2673_s20  ;;  %1186 = vrot.lane.b32.xlu1 %v1176_v56, %s2673_s20  ;;  %v2394_v56 = vld [vmem:[%s3966_s4 + $0xf] ss:$0 sm:$0xff]  ;;  %v2393_v57 = vld [vmem:[%s3966_s4 + $0xe] ss:$0 sm:$0xff] }
  0xeb   : > { %1405 = vperm.xlu0 %2481, %v2374_v58   ;;  %1401 = vperm.xlu1 %2482, %v2373_v59   ;;  %v1545_v58 = vpop.permute.xlu1 %1544 }
  0xef   : > { %1413 = vperm.xlu0 %2481, %v2376_v60   ;;  %1409 = vperm.xlu1 %2482, %v2375_v61   ;;  %v3157_v18 = vpop.permute.xlu1 %1072 }
  0xf3   : > { %1237 = vrot.lane.b32.xlu0 %v1224_v63, %s2674_s17  ;;  %1235 = vrot.lane.b32.xlu1 %v1223_v2, %s2674_s17  ;;  %v1553_v63 = vmul.f32 %v1545_v58, %v2866_v41  ;;  %v1552_v2 = vmul.f32 %v1545_v58, %v2872_v43 }
  0xf7   : > { %1241 = vrot.lane.b32.xlu0 %v1226_v7, %s2674_s17  ;;  %1239 = vrot.lane.b32.xlu1 %v1225_v8, %s2674_s17  ;;  %v1555_v7 = vmul.f32 %v1550_v3, %v2875_v44  ;;  %v1554_v8 = vmul.f32 %v1545_v58, %v1535_v6 }
  0xf9   : > { %v681_v26 = vpop.f32.mrb[0].mxu0 }
  0xfa   : > { %v1009_v27 = vpop.f32.mrb[0].mxu1  ;;  %v683_v28 = vpop.f32.mrb[1].mxu0 }
  0xfb   : > { %1245 = vrot.lane.b32.xlu0 %v1228_v16, %s2674_s17  ;;  %1243 = vrot.lane.b32.xlu1 %v1227_v17, %s2674_s17  ;;  %v1011_v29 = vpop.f32.mrb[1].mxu1  ;;  %v1557_v16 = vmul.f32 %v1550_v3, %v1538_v14  ;;  %v1556_v17 = vmul.f32 %v1550_v3, %v2869_v42 }
  0xfd   : > { %v687_v33 = vpop.f32.mrb[2].mxu0 }
  0xfe   : > { %v1015_v34 = vpop.f32.mrb[2].mxu1  ;;  %v689_v38 = vpop.f32.mrb[3].mxu0 }
  0xff   : > { %1513 = vrot.lane.b32.xlu0 %v1504_v25, %s2673_s20  ;;  %1511 = vrot.lane.b32.xlu1 %v1503_v24, %s2673_s20  ;;  %v1017_v39 = vpop.f32.mrb[3].mxu1  ;;  %v3165_v24 = vpop.permute.xlu1 %1080 }
 0x100   : > { %3994 = vst [vmem:[#allocation10_spill] sm:$0xff] %v3165_v24  ;;  %v3167_v25 = vpop.permute.xlu0 %1084 }
 0x101   : > { %v1338_v46 = vpop.f32.mrb[4].mxu0  ;;  %3995 = vst [vmem:[#allocation11_spill] sm:$0xff] %v3167_v25 }
 0x102   : > { %v1340_v47 = vpop.f32.mrb[5].mxu0  ;;  %v1667_v48 = vpop.f32.mrb[4].mxu1 }
 0x103   : > { %1517 = vrot.lane.b32.xlu0 %v1506_v31, %s2673_s20  ;;  %1515 = vrot.lane.b32.xlu1 %v1505_v30, %s2673_s20  ;;  %v1669_v49 = vpop.f32.mrb[5].mxu1  ;;  %v3171_v30 = vpop.permute.xlu1 %1147 }
 0x104   : > { %v3173_v31 = vpop.permute.xlu0 %1152 }
 0x105   : > { %v1344_v59 = vpop.f32.mrb[6].mxu0  ;;  %v1160_v5 = vmul.f32 %v3173_v31, %v2854_v36 }
 0x106   : > { %v1346_v60 = vpop.f32.mrb[7].mxu0  ;;  %v1673_v61 = vpop.f32.mrb[6].mxu1 }
 0x107   : > { %1734 = vperm.xlu0 %2481, %v2392_v40   ;;  %1730 = vperm.xlu1 %2482, %v2391_v45   ;;  %v1675_v62 = vpop.f32.mrb[7].mxu1 }
 0x10b   : > { %1742 = vperm.xlu0 %2481, %v2394_v56   ;;  %1738 = vperm.xlu1 %2482, %v2393_v57  }
 0x10f   : > { %1566 = vrot.lane.b32.xlu0 %v1553_v63, %s2674_s17  ;;  %1564 = vrot.lane.b32.xlu1 %v1552_v2, %s2674_s17  ;;  %v827_v2 = vmul.f32 %v3074_v9, %v2818_v22 }
 0x113   : > { %1570 = vrot.lane.b32.xlu0 %v1555_v7, %s2674_s17  ;;  %1568 = vrot.lane.b32.xlu1 %v1554_v8, %s2674_s17  ;;  %v812_v7 = vld [vmem:[#allocation2 + $0x60] sm:$0xff] }
 0x117   : > { %1574 = vrot.lane.b32.xlu0 %v1557_v16, %s2674_s17  ;;  %1572 = vrot.lane.b32.xlu1 %v1556_v17, %s2674_s17  ;;  %v829_v16 = vmul.f32 %v3076_v10, %v812_v7  ;;  %v831_v7 = vmul.f32 %v3076_v10, %v2815_v21  ;;  %s292_s17 = sand.u32 1, %s2653_s22  }
 0x118   : > { %s2322_s30 = sshll.u32 %s292_s17, 7  ;;  %s3916_s24 = scalar_lea.sflag [#allocation4], %s292_s17 }
 0x119   : > { %s3872_s8 = scalar_lea.vmem [#allocation3], %s2322_s30 }
 0x11a   : > { %s2217_s12 = sshll.u32 %s3872_s8, 4  ;;  %s3910_s12 = int_to_ptr.vmem [resolvable:$true] %s2217_s12 }
 0x11b   : > { %698 = vrot.lane.b32.xlu0 %v683_v28, %s2673_s20  ;;  %696 = vrot.lane.b32.xlu1 %v681_v26, %s2673_s20  ;;  %v3179_v26 = vpop.permute.xlu1 %1481  ;;  %v3181_v28 = vpop.permute.xlu0 %1476  ;;  %s2591_s16 = scalar_lea.vmem %s3910_s12, 2048  ;;  %p2598_p1 = scmp.lt.s32.totalorder %s3910_s12, %s2596_s19 }
 0x11c   : > { %p2592_p12 = scmp.ne.s32.totalorder %s3910_s12, %s2591_s16  ;;  %p2599_p2 = scmp.lt.s32.totalorder %s2597_s27, %s2591_s16 }
 0x11e   : > { %p2593_p13 = pnand %p2592_p12, %p2754_p4  ;;  %p2600_p3 = por %p2599_p2, %p2598_p1 }
 0x11f   : > { %1026 = vrot.lane.b32.xlu0 %v1011_v29, %s2673_s20  ;;  %1024 = vrot.lane.b32.xlu1 %v1009_v27, %s2673_s20 }
 0x120   : > { %p2594_p0 = pneg %p2593_p13 }
 0x122   : > { %p2601_p5 = pnand %p2600_p3, %p2594_p0 }
 0x123   : > { %702 = vrot.lane.b32.xlu0 %v689_v38, %s2673_s20  ;;  %700 = vrot.lane.b32.xlu1 %v687_v33, %s2673_s20 }
 0x127   : > { %1030 = vrot.lane.b32.xlu0 %v1017_v39, %s2673_s20  ;;  %1028 = vrot.lane.b32.xlu1 %v1015_v34, %s2673_s20 }
 0x12b   : > { %1355 = vrot.lane.b32.xlu0 %v1340_v47, %s2673_s20  ;;  %1353 = vrot.lane.b32.xlu1 %v1338_v46, %s2673_s20 }
 0x12d   : > { %v3185_v27 = vpop.permute.xlu0 %525  ;;  %v3187_v29 = vpop.permute.xlu1 %523 }
 0x12f   : > { %1684 = vrot.lane.b32.xlu0 %v1669_v49, %s2673_s20  ;;  %1682 = vrot.lane.b32.xlu1 %v1667_v48, %s2673_s20 }
 0x131   : > { %v3191_v33 = vpop.permute.xlu0 %529  ;;  %v3193_v38 = vpop.permute.xlu1 %527 }
 0x133   : > { %1359 = vrot.lane.b32.xlu0 %v1346_v60, %s2673_s20  ;;  %1357 = vrot.lane.b32.xlu1 %v1344_v59, %s2673_s20  ;;  %v811_v59 = vld [vmem:[#allocation2 + $0x40] sm:$0xff] }
 0x135   : > { %v3197_v34 = vpop.permute.xlu0 %579  ;;  %v3199_v39 = vpop.permute.xlu1 %577 }
 0x137   : > { %1688 = vrot.lane.b32.xlu0 %v1675_v62, %s2673_s20  ;;  %1686 = vrot.lane.b32.xlu1 %v1673_v61, %s2673_s20  ;;  %v826_v62 = vmul.f32 %v3074_v9, %v811_v59 }
 0x139   : > { %v3203_v40 = vpop.permute.xlu0 %583  ;;  %v3205_v45 = vpop.permute.xlu1 %581 }
 0x13b   : > { %1971 = vrot.lane.b32.xlu0 %v2792_v11, %s2673_s20  ;;  %1969 = vrot.lane.b32.xlu1 %v2795_v12, %s2673_s20 }
 0x13d   : > { %v588_v46 = vpop.permute.xlu0 %587  ;;  %v586_v47 = vpop.permute.xlu1 %585 }
 0x13e   : > { %v3213_v48 = vsel %vm589_vm5, %v3203_v40, %v586_v47  ;;  %v3216_v49 = vsel %vm589_vm5, %v586_v47, %v588_v46 }
 0x13f   : > { %1975 = vrot.lane.b32.xlu0 %v2804_v15, %s2673_s20  ;;  %1973 = vrot.lane.b32.xlu1 %v2798_v13, %s2673_s20 }
 0x141   : > { %v856_v56 = vpop.permute.xlu0 %855  ;;  %v854_v57 = vpop.permute.xlu1 %853 }
 0x142   : > { %v861_v58 = vsel %vm531_vm6, %v854_v57, %v856_v56  ;;  %v869_v3 = vadd.f32 %v854_v57, %v826_v62 }
 0x143   : > { %1979 = vrot.lane.b32.xlu0 %v2812_v20, %s2673_s20  ;;  %1977 = vrot.lane.b32.xlu1 %v2818_v22, %s2673_s20  ;;  %v870_v6 = vadd.f32 %v861_v58, %v827_v2  ;;  %v828_v22 = vmul.f32 %v3074_v9, %v2812_v20  ;;  %v830_v20 = vmul.f32 %v3076_v10, %v2821_v23 }
 0x145   : > { %v860_v60 = vpop.permute.xlu0 %859  ;;  %v858_v61 = vpop.permute.xlu1 %857  ;;  %v871_v58 = vadd.f32 %v856_v56, %v828_v22 }
 0x146   : > { %v862_v63 = vsel %vm531_vm6, %v858_v61, %v860_v60  ;;  %v872_v57 = vadd.f32 %v858_v61, %v829_v16  ;;  %v874_v56 = vadd.f32 %v860_v60, %v831_v7  ;;  %v1141_v7 = vld [vmem:[#allocation2 + $0xa0] sm:$0xff] }
 0x147   : > { %1983 = vrot.lane.b32.xlu0 %v2815_v21, %s2673_s20  ;;  %1981 = vrot.lane.b32.xlu1 %v2821_v23, %s2673_s20  ;;  %v873_v61 = vadd.f32 %v862_v63, %v830_v20 }
 0x149   : > { %v909_v8 = vpop.permute.xlu0 %908  ;;  %v907_v14 = vpop.permute.xlu1 %906 }
 0x14a   : > { %v918_v17 = vsel %vm589_vm5, %v907_v14, %v909_v8  ;;  %v3237_v46 = vadd.f32 %v907_v14, %v869_v3 }
 0x14b   : > { %v3241_v47 = vadd.f32 %v918_v17, %v870_v6  ;;  %1987 = vrot.lane.b32.xlu0 %v2851_v35, %s2673_s20  ;;  %1985 = vrot.lane.b32.xlu1 %v2842_v32, %s2673_s20 }
 0x14d   : > { %v913_v59 = vpop.permute.xlu0 %912  ;;  %v911_v62 = vpop.permute.xlu1 %910 }
 0x14e   : > { %v3247_v2 = vadd.f32 %v913_v59, %v872_v57  ;;  %v919_v3 = vsel %vm589_vm5, %v909_v8, %v911_v62 }
 0x14f   : > { %v3254_v9 = vadd.f32 %v919_v3, %v871_v58  ;;  %1991 = vrot.lane.b32.xlu0 %v2854_v36, %s2673_s20  ;;  %1989 = vrot.lane.b32.xlu1 %v2857_v37, %s2673_s20 }
 0x151   : > { %v917_v6 = vpop.permute.xlu0 %916  ;;  %v915_v14 = vpop.permute.xlu1 %914 }
 0x152   : > { %v920_v8 = vsel %vm589_vm5, %v913_v59, %v915_v14  ;;  %v921_v16 = vsel %vm589_vm5, %v915_v14, %v917_v6  ;;  %v1157_v6 = vmul.f32 %v3171_v30, %v2851_v35 }
 0x153   : > { %v3262_v21 = vadd.f32 %v920_v8, %v873_v61  ;;  %v3264_v17 = vadd.f32 %v921_v16, %v874_v56  ;;  %1995 = vrot.lane.b32.xlu0 %v2866_v41, %s2673_s20  ;;  %1993 = vrot.lane.b32.xlu1 %v2872_v43, %s2673_s20  ;;  %v1158_v61 = vmul.f32 %v3173_v31, %v1141_v7 }
 0x155   : > { %v1185_v23 = vpop.permute.xlu0 %1184  ;;  %v3270_v10 = vpop.permute.xlu1 %1182 }
 0x156   : > { %v3274_v60 = vsel %vm531_vm6, %v3270_v10, %v1185_v23  ;;  %v1200_v8 = vadd.f32 %v1185_v23, %v1157_v6 }
 0x157   : > { %1999 = vrot.lane.b32.xlu0 %v2869_v42, %s2673_s20  ;;  %1997 = vrot.lane.b32.xlu1 %v2875_v44, %s2673_s20  ;;  %s2675_s20 = smov 1  }
 0x159   : > { %v1189_v63 = vpop.permute.xlu0 %1188  ;;  %v1187_v22 = vpop.permute.xlu1 %1186 }
 0x15a   : > { %v1191_v57 = vsel %vm531_vm6, %v1187_v22, %v1189_v63  ;;  %v1201_v14 = vadd.f32 %v1187_v22, %v1158_v61  ;;  %v1203_v7 = vadd.f32 %v1189_v63, %v1160_v5 }
 0x16a   : > { %v3281_v58 = vpop.permute.xlu0 %1405  ;;  %v3283_v59 = vpop.permute.xlu1 %1401 }
 0x16b   : > { %3996 = vst [vmem:[#allocation12_spill] sm:$0xff] %v3281_v58  ;;  %v1488_v58 = vmul.f32 %v3179_v26, %v2875_v44 }
 0x16e   : > { %v3285_v62 = vpop.permute.xlu0 %1413  ;;  %v3287_v3 = vpop.permute.xlu1 %1409 }
 0x16f   : > { %3997 = vst [vmem:[#allocation13_spill] sm:$0xff] %v3285_v62  ;;  %3998 = vst [vmem:[#allocation14_spill] sm:$0xff] %v3287_v3  ;;  %v1159_v3 = vmul.f32 %v3173_v31, %v2857_v37 }
 0x171   : > { %v1202_v24 = vadd.f32 %v1191_v57, %v1159_v3 }
 0x172   : > { %v3289_v20 = vpop.permute.xlu0 %1237  ;;  %v3291_v56 = vpop.permute.xlu1 %1235 }
 0x176   : > { %v1242_v16 = vpop.permute.xlu0 %1241  ;;  %v1240_v53 = vpop.permute.xlu1 %1239 }
 0x177   : > { %v3296_v25 = vadd.f32 %v1242_v16, %v1201_v14  ;;  %v1248_v62 = vsel %vm589_vm5, %v3289_v20, %v1240_v53 }
 0x178   : > { %v3304_v52 = vadd.f32 %v1248_v62, %v1200_v8 }
 0x179   : > { %3999 = vst [vmem:[#allocation15_spill] sm:$0xff] %v3296_v25  ;;  %v482_v25 = vld [vmem:[#allocation2] sm:$0xff] }
 0x17a   : > { %v1246_v35 = vpop.permute.xlu0 %1245  ;;  %v1244_v22 = vpop.permute.xlu1 %1243 }
 0x17b   : > { %v1249_v23 = vsel %vm589_vm5, %v1242_v16, %v1244_v22  ;;  %v1250_v61 = vsel %vm589_vm5, %v1244_v22, %v1246_v35 }
 0x17c   : > { %v3308_v6 = vadd.f32 %v1249_v23, %v1202_v24  ;;  %v3310_v14 = vadd.f32 %v1250_v61, %v1203_v7  ;;  %v1470_v24 = vld [vmem:[#allocation2 + $0xe0] sm:$0xff]  ;;  %v1486_v7 = vmul.f32 %v3181_v28, %v2866_v41  ;;  %v498_v41 = vmul.f32 %v3047_v54, %v2792_v11 }
 0x17d   : > { %v1487_v16 = vmul.f32 %v3179_v26, %v1470_v24 }
 0x17e   : > { %4000 = vst [vmem:[#allocation16_spill] sm:$0xff] %v3308_v6  ;;  %4001 = vst [vmem:[#allocation17_spill] sm:$0xff] %v3310_v14  ;;  %v3312_v53 = vpop.permute.xlu0 %1513  ;;  %v3314_v36 = vpop.permute.xlu1 %1511 }
 0x17f   : > { %v1529_v22 = vadd.f32 %v3312_v53, %v1486_v7 }
 0x182   : > { %v1518_v4 = vpop.permute.xlu0 %1517  ;;  %v1516_v37 = vpop.permute.xlu1 %1515 }
 0x183   : > { %v1520_v31 = vsel %vm531_vm6, %v1516_v37, %v1518_v4  ;;  %v1530_v35 = vadd.f32 %v1516_v37, %v1487_v16  ;;  %v591_v37 = vsel %vm589_vm5, %v3197_v34, %v3205_v45  ;;  %v500_v45 = vmul.f32 %v3049_v55, %v2798_v13  ;;  %v1469_v13 = vld [vmem:[#allocation2 + $0xc0] sm:$0xff] }
 0x184   : > { %v1531_v7 = vadd.f32 %v1520_v31, %v1488_v58  ;;  %v496_v58 = vmul.f32 %v3047_v54, %v482_v25  ;;  %v532_v31 = vsel %vm531_vm6, %v3187_v29, %v3185_v27  ;;  %v590_v25 = vsel %vm589_vm5, %v3199_v39, %v3197_v34 }
 0x186   : > { %v3317_v5 = vpop.permute.xlu0 %1734  ;;  %v3319_v63 = vpop.permute.xlu1 %1730 }
 0x187   : > { %4002 = vst [vmem:[#allocation18_spill] sm:$0xff] %v3317_v5 }
 0x18a   : > { %v3321_v57 = vpop.permute.xlu0 %1742  ;;  %v3323_v62 = vpop.permute.xlu1 %1738 }
 0x18b   : > { %4003 = vst [vmem:[#allocation19_spill] sm:$0xff] %v3321_v57  ;;  %4004 = vst [vmem:[#allocation20_spill] sm:$0xff] %v3323_v62  ;;  %v1489_v62 = vmul.f32 %v3179_v26, %v2869_v42 }
 0x18d   : > { %v1532_v16 = vadd.f32 %v1518_v4, %v1489_v62  ;;  %v497_v4 = vmul.f32 %v3047_v54, %v2795_v12  ;;  %v501_v62 = vmul.f32 %v3049_v55, %v2804_v15  ;;  %v533_v12 = vsel %vm531_vm6, %v3193_v38, %v3191_v33 }
 0x18e   : > { %v3325_v3 = vpop.permute.xlu0 %1566  ;;  %v3327_v8 = vpop.permute.xlu1 %1564  ;;  %v540_v54 = vadd.f32 %v3187_v29, %v496_v58  ;;  %v1484_v15 = vmul.f32 %v3181_v28, %v1469_v13  ;;  %v544_v29 = vadd.f32 %v533_v12, %v500_v45 }
 0x192   : > { %v1571_v23 = vpop.permute.xlu0 %1570  ;;  %v1569_v61 = vpop.permute.xlu1 %1568 }
 0x193   : > { %v3333_v5 = vadd.f32 %v1571_v23, %v1530_v35  ;;  %v1577_v57 = vsel %vm589_vm5, %v3325_v3, %v1569_v61  ;;  %v542_v61 = vadd.f32 %v3185_v27, %v498_v41  ;;  %v1156_v27 = vmul.f32 %v3171_v30, %v2842_v32 }
 0x194   : > { %v3341_v24 = vadd.f32 %v1577_v57, %v1529_v22 }
 0x195   : > { %4005 = vst [vmem:[#allocation21_spill] sm:$0xff] %v3333_v5  ;;  %v602_v57 = vadd.f32 %v591_v37, %v542_v61  ;;  %v1199_v13 = vadd.f32 %v3274_v60, %v1156_v27 }
 0x196   : > { %v1575_v35 = vpop.permute.xlu0 %1574  ;;  %v1573_v5 = vpop.permute.xlu1 %1572 }
 0x197   : > { %v1578_v42 = vsel %vm589_vm5, %v1571_v23, %v1573_v5  ;;  %v1579_v6 = vsel %vm589_vm5, %v1573_v5, %v1575_v35  ;;  %v1140_v5 = vld [vmem:[#allocation2 + $0x80] sm:$0xff] }
 0x198   : > { %v3351_v44 = vadd.f32 %v1578_v42, %v1531_v7  ;;  %v3353_v26 = vadd.f32 %v1579_v6, %v1532_v16  ;;  %v483_v6 = vld [vmem:[#allocation2 + $0x20] sm:$0xff]  ;;  %v1155_v41 = vmul.f32 %v3171_v30, %v1140_v5  ;;  %v541_v16 = vadd.f32 %v532_v31, %v497_v4 }
 0x199   : > { %v499_v23 = vmul.f32 %v3049_v55, %v483_v6  ;;  %v545_v7 = vadd.f32 %v3191_v33, %v501_v62  ;;  %v600_v30 = vadd.f32 %v3199_v39, %v540_v54 }
 0x19a   : > { %v699_v11 = vpop.permute.xlu0 %698  ;;  %v697_v22 = vpop.permute.xlu1 %696  ;;  %v1198_v6 = vadd.f32 %v3270_v10, %v1155_v41 }
 0x19b   : > { %v3355_v14 = vadd.f32 %v699_v11, %v602_v57  ;;  %v543_v35 = vadd.f32 %v3193_v38, %v499_v23  ;;  %v704_v34 = vsel %vm531_vm6, %v697_v22, %v699_v11  ;;  %v601_v57 = vadd.f32 %v590_v25, %v541_v16 }
 0x19c   : > { %v604_v38 = vadd.f32 %v3213_v48, %v544_v29  ;;  %v605_v58 = vadd.f32 %v3216_v49, %v545_v7  ;;  %v3399_v39 = vadd.f32 %v697_v22, %v600_v30  ;;  %v1247_v48 = vsel %vm589_vm5, %v3291_v56, %v3289_v20 }
 0x19d   : > { %v760_v61 = vmul.f32 %v3059_v0, %v3355_v14  ;;  %v766_v42 = vmul.f32 %v3061_v1, %v3355_v14  ;;  %v603_v4 = vadd.f32 %v3203_v40, %v543_v35  ;;  %v3401_v5 = vadd.f32 %v704_v34, %v601_v57 }
 0x19e   : > { %v1027_v37 = vpop.permute.xlu0 %1026  ;;  %v1025_v55 = vpop.permute.xlu1 %1024  ;;  %v1519_v20 = vsel %vm531_vm6, %v3314_v36, %v3312_v53  ;;  %v758_v16 = vmul.f32 %v3059_v0, %v3399_v39  ;;  %v1257_v27 = vadd.f32 %v3291_v56, %v1198_v6  ;;  %v1258_v53 = vadd.f32 %v1247_v48, %v1199_v13 }
 0x19f   : > { %v3387_v32 = vadd.f32 %v1027_v37, %v3254_v9  ;;  %v1032_v33 = vsel %vm531_vm6, %v1025_v55, %v1027_v37  ;;  %v784_v40 = vadd.f32 %v760_v61, %v3041_v51  ;;  %v3408_v49 = vadd.f32 %v1025_v55, %v3237_v46 }
 0x1a0   : > { %v3411_v62 = vadd.f32 %v1032_v33, %v3241_v47  ;;  %v790_v23 = vadd.f32 %v766_v42, %v3039_v50  ;;  %v1485_v37 = vmul.f32 %v3181_v28, %v2872_v43  ;;  %v1527_v55 = vadd.f32 %v3314_v36, %v1484_v15 }
 0x1a1   : > { %v1089_v45 = vmul.f32 %v3157_v18, %v3387_v32  ;;  %v1095_v11 = vmul.f32 %v3159_v19, %v3387_v32  ;;  %v759_v60 = vmul.f32 %v3059_v0, %v3401_v5  ;;  %v1576_v7 = vsel %vm589_vm5, %v3327_v8, %v3325_v3 }
 0x1a2   : > { %v703_v31 = vpop.permute.xlu0 %702  ;;  %v701_v9 = vpop.permute.xlu1 %700  ;;  %v1528_v35 = vadd.f32 %v1519_v20, %v1485_v37  ;;  %v1586_v61 = vadd.f32 %v3327_v8, %v1527_v55  ;;  %v1087_v43 = vmul.f32 %v3157_v18, %v3408_v49  ;;  %v1088_v28 = vmul.f32 %v3157_v18, %v3411_v62 }
 0x1a3   : > { %v3414_v12 = vadd.f32 %v703_v31, %v605_v58  ;;  %v705_v10 = vsel %vm531_vm6, %v701_v9, %v703_v31  ;;  %v3417_v22 = vadd.f32 %v701_v9, %v603_v4  ;;  %v1113_v41 = vadd.f32 %v1089_v45, %v784_v40 }
 0x1a4   : > { %v3423_v46 = vadd.f32 %v705_v10, %v604_v38  ;;  %v3425_v25 = vadd.f32 %v1095_v11, %v790_v23  ;;  %v1587_v8 = vadd.f32 %v1576_v7, %v1528_v35  ;;  %v782_v30 = vadd.f32 %v758_v16, %v3041_v51 }
 0x1a5   : > { %v763_v36 = vmul.f32 %v3059_v0, %v3414_v12  ;;  %v783_v57 = vadd.f32 %v759_v60, %v3041_v51  ;;  %v3467_v38 = vmul.f32 %v3061_v1, %v3399_v39 }
 0x1a6   : > { %v1031_v54 = vpop.permute.xlu0 %1030  ;;  %v1029_v47 = vpop.permute.xlu1 %1028  ;;  %v1111_v58 = vadd.f32 %v1087_v43, %v782_v30  ;;  %v762_v11 = vmul.f32 %v3059_v0, %v3423_v46 }
 0x1a7   : > { %v3446_v15 = vadd.f32 %v1031_v54, %v3264_v17  ;;  %v1033_v56 = vsel %vm531_vm6, %v1029_v47, %v1031_v54  ;;  %v3450_v29 = vadd.f32 %v1029_v47, %v3247_v2  ;;  %v1112_v45 = vadd.f32 %v1088_v28, %v783_v57 }
 0x1a8   : > { %v3453_v34 = vadd.f32 %v1033_v56, %v3262_v21  ;;  %v761_v21 = vmul.f32 %v3059_v0, %v3417_v22  ;;  %v787_v40 = vadd.f32 %v763_v36, %v3041_v51  ;;  %v786_v35 = vadd.f32 %v762_v11, %v3041_v51  ;;  %v4007_v36 = vld [vmem:[#allocation15_spill] sm:$0xff] }
 0x1a9   : > { %v1092_v4 = vmul.f32 %v3157_v18, %v3446_v15 }
 0x1aa   : > { %v1356_v3 = vpop.permute.xlu0 %1355  ;;  %v1354_v42 = vpop.permute.xlu1 %1353  ;;  %v1091_v31 = vmul.f32 %v3157_v18, %v3453_v34  ;;  %v785_v55 = vadd.f32 %v761_v21, %v3041_v51 }
 0x1ab   : > { %v3460_v17 = vadd.f32 %v1356_v3, %v3304_v52  ;;  %v1361_v33 = vsel %vm531_vm6, %v1354_v42, %v1356_v3  ;;  %v3463_v2 = vadd.f32 %v1354_v42, %v1257_v27  ;;  %v1090_v52 = vmul.f32 %v3157_v18, %v3450_v29  ;;  %v4008_v42 = vld [vmem:[#allocation16_spill] sm:$0xff] }
 0x1ac   : > { %v3478_v48 = vadd.f32 %v1361_v33, %v1258_v53  ;;  %v1116_v54 = vadd.f32 %v1092_v4, %v787_v40  ;;  %v1115_v33 = vadd.f32 %v1091_v31, %v786_v35 }
 0x1ad   : > { %v1418_v20 = vmul.f32 %v3283_v59, %v3460_v17  ;;  %v1416_v18 = vmul.f32 %v3283_v59, %v3463_v2  ;;  %v1114_v57 = vadd.f32 %v1090_v52, %v785_v55  ;;  %v4009_v52 = vld [vmem:[#allocation12_spill] sm:$0xff] }
 0x1ae   : > { %v1685_v9 = vpop.permute.xlu0 %1684  ;;  %v1683_v6 = vpop.permute.xlu1 %1682  ;;  %v1424_v40 = vmul.f32 %v4009_v52, %v3460_v17 }
 0x1af   : > { %v3481_v23 = vadd.f32 %v1685_v9, %v3341_v24  ;;  %v1690_v10 = vsel %vm531_vm6, %v1683_v6, %v1685_v9  ;;  %v3484_v13 = vadd.f32 %v1683_v6, %v1586_v61  ;;  %v1417_v24 = vmul.f32 %v3283_v59, %v3478_v48  ;;  %v4006_v61 = vld [vmem:[#allocation17_spill] sm:$0xff] }
 0x1b0   : > { %v3486_v0 = vadd.f32 %v1690_v10, %v1587_v8  ;;  %v1442_v27 = vadd.f32 %v1418_v20, %v1113_v41  ;;  %v1440_v53 = vadd.f32 %v1416_v18, %v1111_v58  ;;  %v765_v58 = vmul.f32 %v3061_v1, %v3401_v5  ;;  %v4010_v20 = vld [vmem:[#allocation21_spill] sm:$0xff] }
 0x1b1   : > { %v1747_v47 = vmul.f32 %v3319_v63, %v3481_v23  ;;  %v1745_v37 = vmul.f32 %v3319_v63, %v3484_v13  ;;  %v1441_v3 = vadd.f32 %v1417_v24, %v1112_v45  ;;  %v1093_v24 = vmul.f32 %v3159_v19, %v3408_v49 }
 0x1b2   : > { %v1360_v16 = vpop.permute.xlu0 %1359  ;;  %v1358_v60 = vpop.permute.xlu1 %1357  ;;  %v1746_v7 = vmul.f32 %v3319_v63, %v3486_v0 }
 0x1b3   : > { %v3503_v43 = vadd.f32 %v1360_v16, %v4006_v61  ;;  %v1362_v28 = vsel %vm531_vm6, %v1358_v60, %v1360_v16  ;;  %v3507_v56 = vadd.f32 %v1358_v60, %v4007_v36  ;;  %v3512_v30 = vadd.f32 %v1747_v47, %v1442_v27 }
 0x1b4   : > { %v3510_v8 = vadd.f32 %v1362_v28, %v4008_v42  ;;  %v3514_v41 = vadd.f32 %v1745_v37, %v1440_v53  ;;  %v3516_v4 = vadd.f32 %v1746_v7, %v1441_v3  ;;  %v1094_v53 = vmul.f32 %v3159_v19, %v3411_v62  ;;  %v4012_v3 = vld [vmem:[#allocation18_spill] sm:$0xff] }
 0x1b5   : > { %v1421_v51 = vmul.f32 %v3283_v59, %v3503_v43  ;;  %v1419_v21 = vmul.f32 %v3283_v59, %v3507_v56  ;;  %v769_v28 = vmul.f32 %v3061_v1, %v3414_v12  ;;  %v1753_v42 = vmul.f32 %v4012_v3, %v3481_v23 }
 0x1b6   : > { %v1689_v45 = vpop.permute.xlu0 %1688  ;;  %v1687_v11 = vpop.permute.xlu1 %1686  ;;  %v1793_v9 = vsub.f32 0.0, %v3514_v41  ;;  %v1420_v6 = vmul.f32 %v3283_v59, %v3510_v8  ;;  %v1794_v47 = vsub.f32 0.0, %v3516_v4 }
 0x1b7   : > { %v3530_v10 = vadd.f32 %v1689_v45, %v3353_v26  ;;  %v1691_v31 = vsel %vm531_vm6, %v1687_v11, %v1689_v45  ;;  %v3534_v18 = vadd.f32 %v1687_v11, %v4010_v20  ;;  %v1445_v55 = vadd.f32 %v1421_v51, %v1116_v54 }
 0x1b8   : > { %v3540_v37 = vadd.f32 %v1691_v31, %v3351_v44  ;;  %v1817_v59 = vmul.f32 1.442695, %v1793_v9  ;;  %v1819_v16 = vmul.f32 1.442695, %v1794_v47  ;;  %v1443_v60 = vadd.f32 %v1419_v21, %v1114_v57 }
 0x1b9   : > { %v1750_v26 = vmul.f32 %v3319_v63, %v3530_v10  ;;  %v1444_v27 = vadd.f32 %v1420_v6, %v1115_v33  ;;  %v1748_v61 = vmul.f32 %v3319_v63, %v3534_v18  ;;  %v1448_v54 = vadd.f32 %v1424_v40, %v3425_v25 }
 0x1ba   : > { %v3546_v7 = vpop.permute.xlu0 %1971  ;;  %v3548_v35 = vpop.permute.xlu1 %1969  ;;  %v1749_v44 = vmul.f32 %v3319_v63, %v3540_v37  ;;  %2483 = vpow2.f32 %v1817_v59  ;;  %v788_v33 = vadd.f32 %v3467_v38, %v3039_v50  ;;  %v767_v63 = vmul.f32 %v3061_v1, %v3417_v22 }
 0x1bb   : > { %4011 = vst [vmem:[#allocation17_spill] sm:$0xff] %v3546_v7  ;;  %v3557_v36 = vadd.f32 %v1750_v26, %v1445_v55  ;;  %2485 = vpow2.f32 %v1819_v16  ;;  %v3561_v57 = vadd.f32 %v1748_v61, %v1443_v60  ;;  %v3570_v21 = vadd.f32 %v1753_v42, %v1448_v54 }
 0x1bc   : > { %v3563_v51 = vadd.f32 %v1749_v44, %v1444_v27  ;;  %v1422_v45 = vmul.f32 %v4009_v52, %v3463_v2  ;;  %v768_v11 = vmul.f32 %v3061_v1, %v3423_v46  ;;  %v1117_v38 = vadd.f32 %v1093_v24, %v788_v33 }
 0x1bd   : > { %v1798_v25 = vsub.f32 0.0, %v3557_v36  ;;  %4013 = vst [vmem:[#allocation15_spill] sm:$0xff] %v3570_v21  ;;  %v1751_v31 = vmul.f32 %v4012_v3, %v3484_v13  ;;  %v1098_v20 = vmul.f32 %v3159_v19, %v3446_v15  ;;  %v1096_v47 = vmul.f32 %v3159_v19, %v3450_v29 }
 0x1be   : > { %v3576_v9 = vpop.permute.xlu0 %1975  ;;  %v1797_v6 = vsub.f32 0.0, %v3563_v51  ;;  %v3579_v40 = vpop.permute.xlu1 %1973  ;;  %v1423_v16 = vmul.f32 %v4009_v52, %v3478_v48  ;;  %v1446_v24 = vadd.f32 %v1422_v45, %v1117_v38  ;;  %v789_v26 = vadd.f32 %v765_v58, %v3039_v50 }
 0x1bf   : > { %4014 = vst [vmem:[#allocation16_spill] sm:$0xff] %v3579_v40  ;;  %v1827_v59 = vmul.f32 1.442695, %v1798_v25  ;;  %v3590_v1 = vsel %vm531_vm6, %v3579_v40, %v3576_v9  ;;  %v1097_v60 = vmul.f32 %v3159_v19, %v3453_v34  ;;  %v793_v27 = vadd.f32 %v769_v28, %v3039_v50 }
 0x1c0   : > { %v1825_v55 = vmul.f32 1.442695, %v1797_v6  ;;  %v1427_v61 = vmul.f32 %v4009_v52, %v3503_v43  ;;  %v1752_v44 = vmul.f32 %v4012_v3, %v3486_v0  ;;  %v3602_v54 = vadd.f32 %v1751_v31, %v1446_v24 }
 0x1c1   : > { %2487 = vpow2.f32 %v1827_v59  ;;  %v1118_v42 = vadd.f32 %v1094_v53, %v789_v26  ;;  %v1756_v33 = vmul.f32 %v4012_v3, %v3530_v10  ;;  %v1122_v58 = vadd.f32 %v1098_v20, %v793_v27  ;;  %v4015_v20 = vld [vmem:[#allocation8_spill] sm:$0xff] }
 0x1c2   : > { %2489 = vpow2.f32 %v1825_v55  ;;  %v791_v25 = vadd.f32 %v767_v63, %v3039_v50  ;;  %v1799_v19 = vsub.f32 0.0, %v3602_v54  ;;  %v792_v28 = vadd.f32 %v768_v11, %v3039_v50 }
 0x1c3   : > { %v1447_v45 = vadd.f32 %v1423_v16, %v1118_v42  ;;  %v1451_v38 = vadd.f32 %v1427_v61, %v1122_v58  ;;  %v1425_v31 = vmul.f32 %v4009_v52, %v3507_v56  ;;  %v772_v63 = vmul.f32 %v4015_v20, %v3355_v14  ;;  %v4017_v61 = vld [vmem:[#allocation10_spill] sm:$0xff] }
 0x1c4   : > { %v2484_v6 = vpop.eup %2483  ;;  %v1120_v59 = vadd.f32 %v1096_v47, %v791_v25  ;;  %v1829_v26 = vmul.f32 1.442695, %v1799_v19  ;;  %v1121_v55 = vadd.f32 %v1097_v60, %v792_v28  ;;  %v1426_v50 = vmul.f32 %v4009_v52, %v3510_v8 }
 0x1c5   : > { %v2486_v24 = vpop.eup %2485  ;;  %v1865_v53 = vadd.f32 1.0, %v2484_v6  ;;  %v3611_v40 = vadd.f32 %v1752_v44, %v1447_v45  ;;  %v3615_v21 = vadd.f32 %v1756_v33, %v1451_v38  ;;  %v1754_v16 = vmul.f32 %v4012_v3, %v3534_v18  ;;  %v4019_v45 = vld [vmem:[#allocation6_spill] sm:$0xff] }
 0x1c6   : > { %v1866_v27 = vadd.f32 1.0, %v2486_v24  ;;  %v1449_v47 = vadd.f32 %v1425_v31, %v1120_v59  ;;  %v1101_v44 = vmul.f32 %v4017_v61, %v3387_v32  ;;  %v1450_v60 = vadd.f32 %v1426_v50, %v1121_v55  ;;  %v4020_v6 = vld [vmem:[#allocation14_spill] sm:$0xff] }
 0x1c7   : > { %4016 = vst [vmem:[#allocation12_spill] sm:$0xff] %v3615_v21  ;;  %2491 = vrcp.f32 %v1865_v53  ;;  %v1800_v11 = vsub.f32 0.0, %v3611_v40  ;;  %v1755_v42 = vmul.f32 %v4012_v3, %v3540_v37  ;;  %v770_v33 = vmul.f32 %v4015_v20, %v3399_v39  ;;  %v4021_v53 = vld [vmem:[#allocation20_spill] sm:$0xff] }
 0x1c8   : > { %2493 = vrcp.f32 %v1866_v27  ;;  %v3628_v58 = vadd.f32 %v1754_v16, %v1449_v47  ;;  %v796_v28 = vadd.f32 %v772_v63, %v4019_v45  ;;  %v1430_v38 = vmul.f32 %v4020_v6, %v3460_v17 }
 0x1c9   : > { %2495 = vpow2.f32 %v1829_v26  ;;  %v1831_v52 = vmul.f32 1.442695, %v1800_v11  ;;  %v3630_v19 = vadd.f32 %v1755_v42, %v1450_v60  ;;  %v1099_v59 = vmul.f32 %v4017_v61, %v3408_v49 }
 0x1ca   : > { %v1125_v24 = vadd.f32 %v1101_v44, %v796_v28  ;;  %v1759_v26 = vmul.f32 %v4021_v53, %v3481_v23  ;;  %v771_v55 = vmul.f32 %v4015_v20, %v3401_v5  ;;  %v794_v63 = vadd.f32 %v770_v33, %v4019_v45 }
 0x1cb   : > { %v2488_v25 = vpop.eup %2487  ;;  %4018 = vst [vmem:[#allocation21_spill] sm:$0xff] %v3630_v19  ;;  %2497 = vpow2.f32 %v1831_v52  ;;  %v1100_v11 = vmul.f32 %v4017_v61, %v3411_v62  ;;  %v1428_v16 = vmul.f32 %v4020_v6, %v3463_v2  ;;  %v775_v44 = vmul.f32 %v4015_v20, %v3414_v12 }
 0x1cc   : > { %v1870_v31 = vadd.f32 1.0, %v2488_v25  ;;  %v2490_v3 = vpop.eup %2489  ;;  %v1454_v50 = vadd.f32 %v1430_v38, %v1125_v24  ;;  %v1123_v47 = vadd.f32 %v1099_v59, %v794_v63  ;;  %v1757_v42 = vmul.f32 %v4021_v53, %v3484_v13 }
 0x1cd   : > { %v1869_v27 = vadd.f32 1.0, %v2490_v3  ;;  %v1429_v33 = vmul.f32 %v4020_v6, %v3478_v48  ;;  %v795_v28 = vadd.f32 %v771_v55, %v4019_v45  ;;  %v1104_v59 = vmul.f32 %v4017_v61, %v3446_v15 }
 0x1ce   : > { %2499 = vrcp.f32 %v1870_v31  ;;  %v3648_v60 = vadd.f32 %v1759_v26, %v1454_v50  ;;  %v1452_v25 = vadd.f32 %v1428_v16, %v1123_v47  ;;  %v2001_v26 = vsel %vm531_vm6, %v3548_v35, %v3546_v7 }
 0x1cf   : > { %2501 = vrcp.f32 %v1869_v27  ;;  %v1124_v63 = vadd.f32 %v1100_v11, %v795_v28  ;;  %v1758_v55 = vmul.f32 %v4021_v53, %v3486_v0  ;;  %v799_v16 = vadd.f32 %v775_v44, %v4019_v45 }
 0x1d0   : > { %v3662_v27 = vadd.f32 %v1757_v42, %v1452_v25  ;;  %v773_v11 = vmul.f32 %v4015_v20, %v3417_v22 }
 0x1d1   : > { %v2492_v52 = vpop.eup %2491  ;;  %v1128_v7 = vadd.f32 %v1104_v59, %v799_v16  ;;  %v1102_v59 = vmul.f32 %v4017_v61, %v3450_v29  ;;  %v4022_v16 = vld [vmem:[#allocation9_spill] sm:$0xff] }
 0x1d2   : > { %v2494_v38 = vpop.eup %2493  ;;  %v1913_v31 = vmul.f32 %v2492_v52, %v3514_v41  ;;  %v1805_v52 = vsub.f32 0.0, %v3662_v27 }
 0x1d3   : > { %v2496_v3 = vpop.eup %2495  ;;  %v1914_v24 = vmul.f32 %v2494_v38, %v3516_v4  ;;  %v1453_v4 = vadd.f32 %v1429_v33, %v1124_v63  ;;  %v1433_v33 = vmul.f32 %v4020_v6, %v3503_v43 }
 0x1d4   : > { %v2033_v50 = vadd.f32 %v3548_v35, %v1913_v31  ;;  %v1871_v47 = vadd.f32 1.0, %v2496_v3  ;;  %v774_v35 = vmul.f32 %v4015_v20, %v3423_v46  ;;  %v1841_v28 = vmul.f32 1.442695, %v1805_v52 }
 0x1d5   : > { %v2498_v19 = vpop.eup %2497  ;;  %v2034_v41 = vadd.f32 %v2001_v26, %v1914_v24  ;;  %v3674_v31 = vadd.f32 %v1758_v55, %v1453_v4  ;;  %v1103_v20 = vmul.f32 %v4017_v61, %v3453_v34  ;;  %v1762_v3 = vmul.f32 %v4021_v53, %v3530_v10 }
 0x1d6   : > { %v2057_v38 = vmax.f32 %v2033_v50, 0.0  ;;  %2503 = vrcp.f32 %v1871_v47  ;;  %v1872_v21 = vadd.f32 1.0, %v2498_v19  ;;  %v1457_v26 = vadd.f32 %v1433_v33, %v1128_v7 }
 0x1d7   : > { %v2058_v25 = vmax.f32 %v2034_v41, 0.0  ;;  %v1806_v24 = vsub.f32 0.0, %v3674_v31  ;;  %v797_v61 = vadd.f32 %v773_v11, %v4019_v45  ;;  %v798_v47 = vadd.f32 %v774_v35, %v4019_v45 }
 0x1d8   : > { %v2500_v42 = vpop.eup %2499  ;;  %2505 = vrcp.f32 %v1872_v21  ;;  %2105 = vrot.lane.b32.xlu1 %v2057_v38, %s2675_s20  ;;  %v3696_v55 = vadd.f32 %v1762_v3, %v1457_v26  ;;  %v1431_v7 = vmul.f32 %v4020_v6, %v3507_v56  ;;  %v1432_v38 = vmul.f32 %v4020_v6, %v3510_v8 }
 0x1d9   : > { %v1918_v44 = vmul.f32 %v2500_v42, %v3557_v36  ;;  %v2502_v19 = vpop.eup %2501  ;;  %2107 = vrot.lane.b32.xlu0 %v2058_v25, %s2675_s20  ;;  %2507 = vpow2.f32 %v1841_v28  ;;  %v1843_v50 = vmul.f32 1.442695, %v1806_v24  ;;  %v1126_v41 = vadd.f32 %v1102_v59, %v797_v61  ;;  %v1978_v25 = vpop.permute.xlu1 %1977 }
 0x1da   : > { %v1917_v21 = vmul.f32 %v2502_v19, %v3563_v51  ;;  %v1127_v52 = vadd.f32 %v1103_v20, %v798_v47  ;;  %v4023_v51 = vld [vmem:[#allocation11_spill] sm:$0xff]  ;;  %v1760_v45 = vmul.f32 %v4021_v53, %v3534_v18  ;;  %v1761_v42 = vmul.f32 %v4021_v53, %v3540_v37  ;;  %v4025_v19 = vld [vmem:[#allocation13_spill] sm:$0xff]  ;;  %v3717_v20 = vpop.permute.xlu0 %1979 }
 0x1db   : > { %v3687_v36 = vadd.f32 %v3576_v9, %v1918_v44  ;;  %v778_v9 = vmul.f32 %v4022_v16, %v3355_v14  ;;  %v1107_v4 = vmul.f32 %v4023_v51, %v3387_v32  ;;  %2509 = vpow2.f32 %v1843_v50  ;;  %v4024_v44 = vld [vmem:[#allocation7_spill] sm:$0xff] }
 0x1dc   : > { %v3692_v63 = vadd.f32 %v3590_v1, %v1917_v21  ;;  %v1455_v11 = vadd.f32 %v1431_v7, %v1126_v41  ;;  %v776_v32 = vmul.f32 %v4022_v16, %v3399_v39  ;;  %v1456_v28 = vadd.f32 %v1432_v38, %v1127_v52  ;;  %v4026_v41 = vld [vmem:[#allocation15_spill] sm:$0xff] }
 0x1dd   : > { %v802_v33 = vadd.f32 %v778_v9, %v4024_v44  ;;  %v1436_v6 = vmul.f32 %v4025_v19, %v3460_v17  ;;  %v1795_v59 = vsub.f32 0.0, %v3512_v30  ;;  %v1796_v24 = vsub.f32 0.0, %v3561_v57 }
 0x1de   : > { %v2003_v39 = vsel %vm531_vm6, %v1978_v25, %v3717_v20  ;;  %v3725_v26 = vadd.f32 %v1761_v42, %v1456_v28  ;;  %v1105_v17 = vmul.f32 %v4023_v51, %v3408_v49  ;;  %v1801_v52 = vsub.f32 0.0, %v4026_v41 }
 0x1df   : > { %v1131_v50 = vadd.f32 %v1107_v4, %v802_v33  ;;  %v800_v4 = vadd.f32 %v776_v32, %v4024_v44  ;;  %v1106_v49 = vmul.f32 %v4023_v51, %v3411_v62  ;;  %v1823_v42 = vmul.f32 1.442695, %v1796_v24 }
 0x1e0   : > { %v2504_v1 = vpop.eup %2503  ;;  %v780_v32 = vmul.f32 %v4022_v16, %v3423_v46  ;;  %v1110_v62 = vmul.f32 %v4023_v51, %v3446_v15  ;;  %v1833_v33 = vmul.f32 1.442695, %v1801_v52  ;;  %v1108_v46 = vmul.f32 %v4023_v51, %v3450_v29 }
 0x1e1   : > { %v1919_v14 = vmul.f32 %v2504_v1, %v3602_v54  ;;  %v3720_v54 = vadd.f32 %v1760_v45, %v1455_v11  ;;  %v1460_v7 = vadd.f32 %v1436_v6, %v1131_v50  ;;  %v4027_v1 = vld [vmem:[#allocation19_spill] sm:$0xff]  ;;  %v1821_v45 = vmul.f32 1.442695, %v1795_v59 }
 0x1e2   : > { %v2506_v35 = vpop.eup %2505  ;;  %v1765_v38 = vmul.f32 %v4027_v1, %v3481_v23  ;;  %v779_v23 = vmul.f32 %v4022_v16, %v3417_v22  ;;  %v1802_v6 = vsub.f32 0.0, %v3628_v58  ;;  %v1764_v29 = vmul.f32 %v4027_v1, %v3486_v0 }
 0x1e3   : > { %v1920_v53 = vmul.f32 %v2506_v35, %v3611_v40  ;;  %v2039_v3 = vadd.f32 %v1978_v25, %v1919_v14  ;;  %v2508_v21 = vpop.eup %2507  ;;  %v777_v40 = vmul.f32 %v4022_v16, %v3401_v5  ;;  %v1434_v5 = vmul.f32 %v4025_v19, %v3463_v2 }
 0x1e4   : > { %v1877_v9 = vadd.f32 1.0, %v2508_v21  ;;  %v3738_v11 = vadd.f32 %v1765_v38, %v1460_v7  ;;  %v781_v35 = vmul.f32 %v4022_v16, %v3414_v12  ;;  %v1129_v25 = vadd.f32 %v1105_v17, %v800_v4 }
 0x1e5   : > { %v2040_v61 = vadd.f32 %v2003_v39, %v1920_v53  ;;  %v2063_v47 = vmax.f32 %v2039_v3, 0.0  ;;  %v2510_v28 = vpop.eup %2509  ;;  %v1763_v2 = vmul.f32 %v4027_v1, %v3484_v13  ;;  %v1807_v12 = vsub.f32 0.0, %v3648_v60  ;;  %v3762_v3 = vpop.permute.xlu1 %1981 }
 0x1e6   : > { %2511 = vrcp.f32 %v1877_v9  ;;  %v1878_v22 = vadd.f32 1.0, %v2510_v28  ;;  %v1458_v59 = vadd.f32 %v1434_v5, %v1129_v25  ;;  %v1435_v16 = vmul.f32 %v4025_v19, %v3478_v48 }
 0x1e7   : > { %v2064_v14 = vmax.f32 %v2040_v61, 0.0  ;;  %2117 = vrot.lane.b32.xlu1 %v2063_v47, %s2675_s20  ;;  %2513 = vpow2.f32 %v1821_v45  ;;  %v801_v15 = vadd.f32 %v777_v40, %v4024_v44  ;;  %v1109_v53 = vmul.f32 %v4023_v51, %v3453_v34  ;;  %v3772_v51 = vpop.permute.xlu0 %1983 }
 0x1e8   : > { %2515 = vpow2.f32 %v1823_v42  ;;  %v3764_v13 = vadd.f32 %v1763_v2, %v1458_v59  ;;  %v805_v21 = vadd.f32 %v781_v35, %v4024_v44  ;;  %v1835_v24 = vmul.f32 1.442695, %v1802_v6  ;;  %v4028_v59 = vld [vmem:[#allocation12_spill] sm:$0xff] }
 0x1e9   : > { %2119 = vrot.lane.b32.xlu0 %v2064_v14, %s2675_s20  ;;  %2517 = vrcp.f32 %v1878_v22  ;;  %v1130_v39 = vadd.f32 %v1106_v49, %v801_v15  ;;  %v1845_v50 = vmul.f32 1.442695, %v1807_v12  ;;  %v1439_v34 = vmul.f32 %v4025_v19, %v3503_v43  ;;  %v1986_v42 = vpop.permute.xlu1 %1985 }
 0x1ea   : > { %2519 = vpow2.f32 %v1833_v33  ;;  %v1811_v48 = vsub.f32 0.0, %v3764_v13  ;;  %v1134_v17 = vadd.f32 %v1110_v62, %v805_v21  ;;  %v1808_v61 = vsub.f32 0.0, %v3720_v54  ;;  %v4029_v21 = vld [vmem:[#allocation21_spill] sm:$0xff] }
 0x1eb   : > { %v1459_v47 = vadd.f32 %v1435_v16, %v1130_v39  ;;  %v1768_v9 = vmul.f32 %v4027_v1, %v3530_v10  ;;  %v803_v40 = vadd.f32 %v779_v23, %v4024_v44  ;;  %v1813_v0 = vsub.f32 0.0, %v3738_v11  ;;  %v3792_v62 = vpop.permute.xlu0 %1987 }
 0x1ec   : > { %v1853_v7 = vmul.f32 1.442695, %v1811_v48  ;;  %v1463_v38 = vadd.f32 %v1439_v34, %v1134_v17  ;;  %v804_v45 = vadd.f32 %v780_v32, %v4024_v44  ;;  %v1437_v49 = vmul.f32 %v4025_v19, %v3507_v56 }
 0x1ed   : > { %v3781_v43 = vadd.f32 %v1764_v29, %v1459_v47  ;;  %v1132_v4 = vadd.f32 %v1108_v46, %v803_v40  ;;  %v1438_v44 = vmul.f32 %v4025_v19, %v3510_v8  ;;  %v1766_v28 = vmul.f32 %v4027_v1, %v3534_v18 }
 0x1ee   : > { %2521 = vpow2.f32 %v1853_v7  ;;  %v3785_v10 = vadd.f32 %v1768_v9, %v1463_v38  ;;  %v1133_v5 = vadd.f32 %v1109_v53, %v804_v45  ;;  %v1847_v6 = vmul.f32 1.442695, %v1808_v61 }
 0x1ef   : > { %2523 = vpow2.f32 %v1835_v24  ;;  %v1812_v23 = vsub.f32 0.0, %v3781_v43  ;;  %v1461_v25 = vadd.f32 %v1437_v49, %v1132_v4  ;;  %v1804_v46 = vsub.f32 0.0, %v4028_v59 }
 0x1f0   : > { %v2512_v52 = vpop.eup %2511  ;;  %2525 = vpow2.f32 %v1845_v50  ;;  %v1462_v12 = vadd.f32 %v1438_v44, %v1133_v5  ;;  %v2005_v8 = vsel %vm531_vm6, %v1986_v42, %v3792_v62  ;;  %v1767_v19 = vmul.f32 %v4027_v1, %v3540_v37 }
 0x1f1   : > { %v1925_v14 = vmul.f32 %v2512_v52, %v3662_v27  ;;  %v2514_v32 = vpop.eup %2513  ;;  %v1857_v27 = vmul.f32 1.442695, %v1813_v0  ;;  %v1855_v2 = vmul.f32 1.442695, %v1812_v23  ;;  %v3799_v16 = vadd.f32 %v1766_v28, %v1461_v25  ;;  %v3811_v23 = vpop.permute.xlu1 %1989 }
 0x1f2   : > { %v2516_v56 = vpop.eup %2515  ;;  %v1867_v18 = vadd.f32 1.0, %v2514_v32  ;;  %v1803_v24 = vsub.f32 0.0, %v4029_v21  ;;  %v3804_v29 = vadd.f32 %v1767_v19, %v1462_v12  ;;  %v1839_v48 = vmul.f32 1.442695, %v1804_v46  ;;  %v3813_v32 = vpop.permute.xlu0 %1991 }
 0x1f3   : > { %v2045_v35 = vadd.f32 %v1986_v42, %v1925_v14  ;;  %v2518_v22 = vpop.eup %2517  ;;  %2527 = vpow2.f32 %v1855_v2  ;;  %v1814_v39 = vsub.f32 0.0, %v3799_v16  ;;  %v1809_v17 = vsub.f32 0.0, %v3725_v26 }
 0x1f4   : > { %v2520_v15 = vpop.eup %2519  ;;  %v1926_v53 = vmul.f32 %v2518_v22, %v3674_v31  ;;  %2529 = vpow2.f32 %v1857_v27  ;;  %v1837_v31 = vmul.f32 1.442695, %v1803_v24  ;;  %v1868_v52 = vadd.f32 1.0, %v2516_v56 }
 0x1f5   : > { %v2069_v33 = vmax.f32 %v2045_v35, 0.0  ;;  %2531 = vpow2.f32 %v1847_v6  ;;  %v1859_v37 = vmul.f32 1.442695, %v1814_v39  ;;  %v1873_v47 = vadd.f32 1.0, %v2520_v15  ;;  %v1994_v22 = vpop.permute.xlu1 %1993 }
 0x1f6   : > { %v2046_v50 = vadd.f32 %v2005_v8, %v1926_v53  ;;  %2533 = vrcp.f32 %v1867_v18  ;;  %v1810_v0 = vsub.f32 0.0, %v3696_v55  ;;  %v1849_v7 = vmul.f32 1.442695, %v1809_v17  ;;  %v1996_v53 = vpop.permute.xlu0 %1995 }
 0x1f7   : > { %2129 = vrot.lane.b32.xlu1 %v2069_v33, %s2675_s20  ;;  %2535 = vpow2.f32 %v1859_v37  ;;  %v1815_v38 = vsub.f32 0.0, %v3804_v29  ;;  %v1816_v25 = vsub.f32 0.0, %v3785_v10 }
 0x1f8   : > { %v2070_v1 = vmax.f32 %v2046_v50, 0.0  ;;  %v2522_v34 = vpop.eup %2521  ;;  %2537 = vpow2.f32 %v1839_v48  ;;  %v1851_v35 = vmul.f32 1.442695, %v1810_v0  ;;  %v4030_v48 = vld [vmem:[#allocation17_spill] sm:$0xff] }
 0x1f9   : > { %v2524_v61 = vpop.eup %2523  ;;  %v1883_v9 = vadd.f32 1.0, %v2522_v34  ;;  %v1861_v44 = vmul.f32 1.442695, %v1815_v38  ;;  %v1863_v46 = vmul.f32 1.442695, %v1816_v25  ;;  %v2007_v34 = vsel %vm531_vm6, %v1994_v22, %v1996_v53 }
 0x1fa   : > { %2131 = vrot.lane.b32.xlu0 %v2070_v1, %s2675_s20  ;;  %v2526_v40 = vpop.eup %2525  ;;  %v1874_v49 = vadd.f32 1.0, %v2524_v61 }
 0x1fb   : > { %2539 = vrcp.f32 %v1883_v9  ;;  %v1879_v14 = vadd.f32 1.0, %v2526_v40 }
 0x1fc   : > { %2541 = vpow2.f32 %v1837_v31 }
 0x1fd   : > { %v2528_v45 = vpop.eup %2527  ;;  %2543 = vrcp.f32 %v1873_v47 }
 0x1fe   : > { %v2530_v4 = vpop.eup %2529  ;;  %2545 = vrcp.f32 %v1868_v52  ;;  %v1884_v42 = vadd.f32 1.0, %v2528_v45 }
 0x1ff   : > { %v2532_v5 = vpop.eup %2531  ;;  %2547 = vpow2.f32 %v1849_v7  ;;  %v1885_v27 = vadd.f32 1.0, %v2530_v4 }
 0x200   : > { %2549 = vrcp.f32 %v1884_v42  ;;  %v2534_v28 = vpop.eup %2533  ;;  %v1880_v56 = vadd.f32 1.0, %v2532_v5 }
 0x201   : > { %2551 = vrcp.f32 %v1879_v14  ;;  %v2536_v33 = vpop.eup %2535  ;;  %v1915_v12 = vmul.f32 %v2534_v28, %v3512_v30 }
 0x202   : > { %2553 = vrcp.f32 %v1874_v49  ;;  %v2538_v6 = vpop.eup %2537  ;;  %v1886_v15 = vadd.f32 1.0, %v2536_v33  ;;  %v4031_v49 = vld [vmem:[#allocation16_spill] sm:$0xff] }
 0x203   : > { %2555 = vpow2.f32 %v1851_v35  ;;  %v2035_v37 = vadd.f32 %v4030_v48, %v1915_v12  ;;  %v1876_v40 = vadd.f32 1.0, %v2538_v6 }
 0x204   : > { %2557 = vpow2.f32 %v1861_v44 }
 0x205   : > { %v2540_v2 = vpop.eup %2539  ;;  %2559 = vrcp.f32 %v1885_v27  ;;  %v2059_v45 = vmax.f32 %v2035_v37, 0.0 }
 0x206   : > { %v2542_v8 = vpop.eup %2541  ;;  %2561 = vrcp.f32 %v1880_v56  ;;  %v1931_v19 = vmul.f32 %v2540_v2, %v3764_v13 }
 0x207   : > { %v2544_v18 = vpop.eup %2543  ;;  %v1875_v1 = vadd.f32 1.0, %v2542_v8  ;;  %2563 = vpow2.f32 %v1863_v46  ;;  %v1998_v8 = vpop.permute.xlu1 %1997 }
 0x208   : > { %v2546_v24 = vpop.eup %2545  ;;  %v2051_v39 = vadd.f32 %v1994_v22, %v1931_v19  ;;  %v1921_v30 = vmul.f32 %v2544_v18, %v4026_v41  ;;  %2565 = vrcp.f32 %v1886_v15 }
 0x209   : > { %v2548_v50 = vpop.eup %2547  ;;  %v1916_v13 = vmul.f32 %v2546_v24, %v3561_v57  ;;  %2567 = vrcp.f32 %v1875_v1  ;;  %v2006_v1 = vsel %vm531_vm6, %v3811_v23, %v3813_v32 }
 0x20a   : > { %v2550_v17 = vpop.eup %2549  ;;  %v2075_v31 = vmax.f32 %v2051_v39, 0.0  ;;  %v1881_v0 = vadd.f32 1.0, %v2548_v50  ;;  %v2041_v41 = vadd.f32 %v3717_v20, %v1921_v30  ;;  %2569 = vrcp.f32 %v1876_v40 }
 0x20b   : > { %v2552_v61 = vpop.eup %2551  ;;  %v1932_v47 = vmul.f32 %v2550_v17, %v3781_v43  ;;  %v2036_v42 = vadd.f32 %v4031_v49, %v1916_v13  ;;  %v2004_v39 = vsel %vm531_vm6, %v3762_v3, %v3772_v51 }
 0x20c   : > { %v2554_v9 = vpop.eup %2553  ;;  %2141 = vrot.lane.b32.xlu1 %v2075_v31, %s2675_s20  ;;  %v1927_v14 = vmul.f32 %v2552_v61, %v3648_v60  ;;  %2571 = vrcp.f32 %v1881_v0  ;;  %v2065_v44 = vmax.f32 %v2041_v41, 0.0 }
 0x20d   : > { %v2556_v52 = vpop.eup %2555  ;;  %v2052_v7 = vadd.f32 %v2007_v34, %v1932_v47  ;;  %v1922_v57 = vmul.f32 %v2554_v9, %v3628_v58  ;;  %v2060_v28 = vmax.f32 %v2036_v42, 0.0  ;;  %v2000_v34 = vpop.permute.xlu0 %1999 }
 0x20e   : > { %v2558_v38 = vpop.eup %2557  ;;  %v2047_v27 = vadd.f32 %v3792_v62, %v1927_v14  ;;  %v1882_v20 = vadd.f32 1.0, %v2556_v52  ;;  %v2008_v13 = vsel %vm531_vm6, %v1998_v8, %v2000_v34 }
 0x20f   : > { %v2560_v4 = vpop.eup %2559  ;;  %v2076_v43 = vmax.f32 %v2052_v7, 0.0  ;;  %v1887_v35 = vadd.f32 1.0, %v2558_v38  ;;  %v2042_v56 = vadd.f32 %v3762_v3, %v1922_v57 }
 0x210   : > { %v2562_v5 = vpop.eup %2561  ;;  %2109 = vrot.lane.b32.xlu1 %v2059_v45, %s2675_s20  ;;  %v1933_v60 = vmul.f32 %v2560_v4, %v3738_v11  ;;  %v2071_v6 = vmax.f32 %v2047_v27, 0.0 }
 0x211   : > { %2143 = vrot.lane.b32.xlu0 %v2076_v43, %s2675_s20  ;;  %v2564_v25 = vpop.eup %2563  ;;  %v1928_v58 = vmul.f32 %v2562_v5, %v3720_v54  ;;  %2573 = vrcp.f32 %v1887_v35  ;;  %v2066_v22 = vmax.f32 %v2042_v56, 0.0 }
 0x212   : > { %v2566_v33 = vpop.eup %2565  ;;  %2575 = vrcp.f32 %v1882_v20  ;;  %v2053_v2 = vadd.f32 %v1996_v53, %v1933_v60  ;;  %v1888_v12 = vadd.f32 1.0, %v2564_v25 }
 0x213   : > { %v2568_v62 = vpop.eup %2567  ;;  %v2048_v11 = vadd.f32 %v3811_v23, %v1928_v58  ;;  %v1934_v46 = vmul.f32 %v2566_v33, %v3799_v16  ;;  %v2061_v16 = vmax.f32 %v3692_v63, 0.0 }
 0x214   : > { %2121 = vrot.lane.b32.xlu1 %v2065_v44, %s2675_s20  ;;  %v2570_v54 = vpop.eup %2569  ;;  %v1923_v19 = vmul.f32 %v2568_v62, %v4029_v21  ;;  %v2077_v15 = vmax.f32 %v2053_v2, 0.0  ;;  %2577 = vrcp.f32 %v1888_v12 }
 0x215   : > { %2111 = vrot.lane.b32.xlu0 %v2060_v28, %s2675_s20  ;;  %v2072_v24 = vmax.f32 %v2048_v11, 0.0  ;;  %v2054_v53 = vadd.f32 %v1998_v8, %v1934_v46  ;;  %v1924_v21 = vmul.f32 %v2570_v54, %v4028_v59 }
 0x216   : > { %v2572_v18 = vpop.eup %2571  ;;  %v2043_v50 = vadd.f32 %v2004_v39, %v1923_v19 }
 0x217   : > { %v1929_v48 = vmul.f32 %v2572_v18, %v3725_v26  ;;  %v2078_v17 = vmax.f32 %v2054_v53, 0.0  ;;  %v2062_v26 = vmax.f32 %v3687_v36, 0.0  ;;  %v2044_v61 = vadd.f32 %v3772_v51, %v1924_v21 }
 0x218   : > { %2133 = vrot.lane.b32.xlu1 %v2071_v6, %s2675_s20  ;;  %v2067_v3 = vmax.f32 %v2043_v50, 0.0 }
 0x219   : > { %2123 = vrot.lane.b32.xlu0 %v2066_v22, %s2675_s20  ;;  %v2049_v31 = vadd.f32 %v2006_v1, %v1929_v48  ;;  %v2068_v40 = vmax.f32 %v2044_v61, 0.0 }
 0x21b   : > { %v2574_v37 = vpop.eup %2573  ;;  %v2073_v47 = vmax.f32 %v2049_v31, 0.0 }
 0x21c   : > { %2145 = vrot.lane.b32.xlu1 %v2077_v15, %s2675_s20  ;;  %v2576_v30 = vpop.eup %2575  ;;  %v1935_v63 = vmul.f32 %v2574_v37, %v3804_v29 }
 0x21d   : > { %2135 = vrot.lane.b32.xlu0 %v2072_v24, %s2675_s20  ;;  %v1930_v59 = vmul.f32 %v2576_v30, %v3696_v55 }
 0x21e   : > { %v2578_v23 = vpop.eup %2577  ;;  %v2055_v9 = vadd.f32 %v2008_v13, %v1935_v63 }
 0x21f   : > { %v2050_v29 = vadd.f32 %v3813_v32, %v1930_v59  ;;  %v1936_v36 = vmul.f32 %v2578_v23, %v3785_v10 }
 0x220   : > { %2113 = vrot.lane.b32.xlu1 %v2061_v16, %s2675_s20  ;;  %v2079_v55 = vmax.f32 %v2055_v9, 0.0 }
 0x221   : > { %2147 = vrot.lane.b32.xlu0 %v2078_v17, %s2675_s20  ;;  %v2074_v51 = vmax.f32 %v2050_v29, 0.0  ;;  %v2056_v52 = vadd.f32 %v2000_v34, %v1936_v36 }
 0x223   : > { %v2080_v0 = vmax.f32 %v2056_v52, 0.0 }
 0x224   : > { %2125 = vrot.lane.b32.xlu1 %v2067_v3, %s2675_s20 }
 0x225   : > { %2115 = vrot.lane.b32.xlu0 %v2062_v26, %s2675_s20 }
 0x228   : > { %2137 = vrot.lane.b32.xlu1 %v2073_v47, %s2675_s20 }
 0x229   : > { %2127 = vrot.lane.b32.xlu0 %v2068_v40, %s2675_s20 }
 0x22c   : > { %2149 = vrot.lane.b32.xlu1 %v2079_v55, %s2675_s20 }
 0x22d   : > { %2139 = vrot.lane.b32.xlu0 %v2074_v51, %s2675_s20 }
 0x231   : > { %2151 = vrot.lane.b32.xlu0 %v2080_v0, %s2675_s20 }
 0x24a   : > { %v2106_v32 = vpop.permute.xlu1 %2105 }
 0x24b   : > { %v2108_v7 = vpop.permute.xlu0 %2107 }
 0x24c   : > { %v2153_v10 = vsel %vm425_vm4, %v2106_v32, %v2108_v7 }
 0x24d   : > { %2185 = vst [vmem:[%s3872_s8] sm:$0xff] %v2153_v10 }
 0x259   : > { %v2118_v38 = vpop.permute.xlu1 %2117 }
 0x25b   : > { %v2120_v45 = vpop.permute.xlu0 %2119 }
 0x25c   : > { %v2157_v41 = vsel %vm425_vm4, %v2118_v38, %v2120_v45 }
 0x25d   : > { %2189 = vst [vmem:[%s3872_s8 + $0x20] sm:$0xff] %v2157_v41 }
 0x269   : > { %v2130_v14 = vpop.permute.xlu1 %2129 }
 0x26c   : > { %v2132_v4 = vpop.permute.xlu0 %2131 }
 0x26d   : > { %v2161_v49 = vsel %vm425_vm4, %v2130_v14, %v2132_v4 }
 0x26e   : > { %2193 = vst [vmem:[%s3872_s8 + $0x40] sm:$0xff] %v2161_v49 }
 0x27e   : > { %v2142_v42 = vpop.permute.xlu1 %2141 }
 0x282   : > { %v2110_v57 = vpop.permute.xlu1 %2109 }
 0x283   : > { %v2144_v43 = vpop.permute.xlu0 %2143  ;;  %v2154_v5 = vsel %vm425_vm4, %v2108_v7, %v2110_v57 }
 0x284   : > { %v2165_v35 = vsel %vm425_vm4, %v2142_v42, %v2144_v43  ;;  %2186 = vst [vmem:[%s3872_s8 + $0x8] sm:$0xff] %v2154_v5 }
 0x285   : > { %2197 = vst [vmem:[%s3872_s8 + $0x60] sm:$0xff] %v2165_v35 }
 0x286   : > { %v2122_v44 = vpop.permute.xlu1 %2121 }
 0x287   : > { %v2112_v27 = vpop.permute.xlu0 %2111  ;;  %v2158_v20 = vsel %vm425_vm4, %v2120_v45, %v2122_v44 }
 0x288   : > { %2190 = vst [vmem:[%s3872_s8 + $0x28] sm:$0xff] %v2158_v20 }
 0x28a   : > { %v2134_v60 = vpop.permute.xlu1 %2133 }
 0x28b   : > { %v2124_v25 = vpop.permute.xlu0 %2123  ;;  %v2162_v28 = vsel %vm425_vm4, %v2132_v4, %v2134_v60 }
 0x28c   : > { %2194 = vst [vmem:[%s3872_s8 + $0x48] sm:$0xff] %v2162_v28 }
 0x28e   : > { %v2146_v56 = vpop.permute.xlu1 %2145 }
 0x28f   : > { %v2136_v58 = vpop.permute.xlu0 %2135  ;;  %v2166_v33 = vsel %vm425_vm4, %v2144_v43, %v2146_v56 }
 0x290   : > { %2198 = vst [vmem:[%s3872_s8 + $0x68] sm:$0xff] %v2166_v33 }
 0x292   : > { %v2114_v6 = vpop.permute.xlu1 %2113 }
 0x293   : > { %v2148_v2 = vpop.permute.xlu0 %2147  ;;  %v2155_v12 = vsel %vm425_vm4, %v2112_v27, %v2114_v6 }
 0x294   : > { %2187 = vst [vmem:[%s3872_s8 + $0x10] sm:$0xff] %v2155_v12 }
 0x296   : > { %v2126_v62 = vpop.permute.xlu1 %2125 }
 0x297   : > { %v2116_v22 = vpop.permute.xlu0 %2115  ;;  %v2159_v11 = vsel %vm425_vm4, %v2124_v25, %v2126_v62 }
 0x298   : > { %v2156_v46 = vsel %vm425_vm4, %v2114_v6, %v2116_v22  ;;  %2191 = vst [vmem:[%s3872_s8 + $0x30] sm:$0xff] %v2159_v11 }
 0x299   : > { %2188 = vst [vmem:[%s3872_s8 + $0x18] sm:$0xff] %v2156_v46 }
 0x29a   : > { %v2138_v8 = vpop.permute.xlu1 %2137 }
 0x29b   : > { %v2128_v54 = vpop.permute.xlu0 %2127  ;;  %v2163_v19 = vsel %vm425_vm4, %v2136_v58, %v2138_v8 }
 0x29c   : > { %v2160_v15 = vsel %vm425_vm4, %v2126_v62, %v2128_v54  ;;  %2195 = vst [vmem:[%s3872_s8 + $0x50] sm:$0xff] %v2163_v19 }
 0x29d   : > { %2192 = vst [vmem:[%s3872_s8 + $0x38] sm:$0xff] %v2160_v15 }
 0x29e   : > { %v2150_v18 = vpop.permute.xlu1 %2149 }
 0x29f   : > { %v2140_v24 = vpop.permute.xlu0 %2139  ;;  %v2167_v53 = vsel %vm425_vm4, %v2148_v2, %v2150_v18 }
 0x2a0   : > { %v2164_v39 = vsel %vm425_vm4, %v2138_v8, %v2140_v24  ;;  %2199 = vst [vmem:[%s3872_s8 + $0x70] sm:$0xff] %v2167_v53 }
 0x2a1   : > { %2196 = vst [vmem:[%s3872_s8 + $0x58] sm:$0xff] %v2164_v39 }
 0x2a3   : > { %v2152_v16 = vpop.permute.xlu0 %2151 }
 0x2a4   : > { %v2168_v50 = vsel %vm425_vm4, %v2150_v18, %v2152_v16 }
 0x2a5   : > { %2200 = vst [vmem:[%s3872_s8 + $0x78] sm:$0xff] %v2168_v50 }
 0x2a6   : > { %2604 = shalt.err (!%p2601_p5)
}
 0x2a7   : > { %s2605_s28 = scalar_lea.hbm %s3908_s15, 2048  ;;  %s2609_s30 = scalar_lea.hbm %s3968_s6, 4096 }
 0x2a8   : > { %p2606_p6 = scmp.ne.s32.totalorder %s3908_s15, %s2605_s28  ;;  %p2610_p10 = scmp.lt.u32.totalorder %s3908_s15, %s3968_s6 }
 0x2a9   : > { %p2611_p11 = scmp.lt.u32.totalorder %s2609_s30, %s2605_s28  ;;  %p2613_p13 = scmp.lt.u32.totalorder %s2605_s28, %s3908_s15 }
 0x2aa   : > { %p2607_p7 = pnand %p2606_p6, %p2754_p4 }
 0x2ab   : > { %p2612_p12 = por %p2611_p11, %p2610_p10 }
 0x2ac   : > { %p2608_p9 = pneg %p2607_p7 }
 0x2ad   : > { %p2614_p0 = por %p2613_p13, %p2612_p12 }
 0x2af   : > { %p2615_p1 = pnand %p2614_p0, %p2608_p9 }
 0x2b1   : > { %2618 = shalt.err (!%p2615_p1)
}
 0x2b2   : > { %s2677_s13 = smov 256   ;;  %s2678_s14 = smov 16  }
 0x2b3   : > { %2419 = dma.vmem_to_hbm [thread:$0]  (%p2754_p4), %s3910_s12, 2048, %s3908_s15, %s3916_s24, %s2677_s13, %s2677_s13, %s2678_s14  }
 0x2b4 PF: > { %p2425_p2 = scmp.ge.s32.totalorder %s2669_s26, 2  ;;  %s2232_s16 = sand.u32 1, %s2649_s21  }
 0x2b5   : > { %s2233_s18 = scalar_lea.sflag [#allocation4], %s2232_s16 }
 0x2b6   : > { %p2422_p3 = pnand %p2425_p2, %p2761_p8 }
 0x2b8   : > { %2644 = dma.done.wait (!%p2422_p3), %s2233_s18, 2048  }
 0x2b9   : > { %2646 = vsyncadd (!%p2422_p3), %s2233_s18, 4294965248  ;;  %s19_s26 = sadd.s32 1, %s2669_s26   ;;  %s4032_s21 = smov %s2653_s22 }
 0x2ba   : > { %p16_p5 = scmp.ge.s32.totalorder %s19_s26, 4   ;;  %s4033_s22 = smov %s2657_s23 }
 0x2bb   : > { %s4034_s23 = smov %s2767_s10  ;;  %s4035_s24 = smov %s2665_s25 }
 0x2bc   : > { %s4036_s25 = smov %s4038_s29  ;;  %18 = sbr.rel (!%p16_p5) target bundleno = 4 (0x4), region = 102 }
 0x2c3   :  { %2238 = vsyncpa [#allocation4], 1 }
 0x2c4   :  { %2240 = vsyncpa [#allocation4 + $0x1], 1 }

</bundles_post_ra>
